<compile_context>
chip_gen: v7x
topology: tpu7x:2x2x1
jax: 0.10.0
libtpu: 0.0.40
codegen_flags: <defaults>
</compile_context>

<pallas_src>
import functools

import jax
import jax.numpy as jnp
from jax import lax
from jax.experimental import pallas as pl
from jax.experimental.pallas import tpu as pltpu


def _round_up(x, m):
    return ((x + m - 1) // m) * m


def _fcl_tile_kernel(hs_row_ref, hst_col_ref, lab_row_ref, lab_col_ref,   # inputs
                     out_ref,                                             # output
                     m_s, l_y_s, l_g_s, spos_y_s, cnt_y_s, spos_g_s, cnt_g_s,  # scratch
                     *, n_real, pad, tm, tn,
                     temperature_y, base_temperature_y,
                     temperature_g, base_temperature_g,
                     fcl_lambda_y, fcl_lambda_g,
                     share_stats, assume_normalized):
    f32 = jnp.float32
    i = pl.program_id(0)
    j = pl.program_id(1)
    n_col_blocks = pl.num_programs(1)
    row_off = i * tm
    col_off = j * tn
    inv_ty = f32(1.0 / temperature_y)
    inv_tg = f32(1.0 / temperature_g)

    @pl.when(j == 0)
    def _init():
        m_s[...] = jnp.full_like(m_s, -1e30)
        l_y_s[...] = jnp.zeros_like(l_y_s)
        l_g_s[...] = jnp.zeros_like(l_g_s)
        spos_y_s[...] = jnp.zeros_like(spos_y_s)
        cnt_y_s[...] = jnp.zeros_like(cnt_y_s)
        spos_g_s[...] = jnp.zeros_like(spos_g_s)
        cnt_g_s[...] = jnp.zeros_like(cnt_g_s)

    # MXU: (tm, d) @ (d, tn).  RHS is pre-transposed in the wrapper, so this is the natural
    # orientation (no per-step XLU transpose).  Native input dtype, f32 accumulation.
    sim = lax.dot_general(
        hs_row_ref[...], hst_col_ref[...],
        dimension_numbers=(((1,), (0,)), ((), ())),
        preferred_element_type=f32)                                     # (tm, tn) f32

    # Label equality via broadcast of (tm,1) against (1,tn) -- no (tm,tn) iotas.
    lab_y_r = lab_row_ref[:, 0:1]      # (tm, 1) anchor main-task labels
    lab_g_r = lab_row_ref[:, 1:2]      # (tm, 1) anchor protected labels
    lab_y_c = lab_col_ref[0:1, :]      # (1, tn) contrast main-task labels
    lab_g_c = lab_col_ref[1:2, :]      # (1, tn) contrast protected labels
    eq_y = lab_y_r == lab_y_c          # (tm, tn) bool
    eq_g = lab_g_r == lab_g_c          # (tm, tn) bool

    def accumulate(masked):
        if masked:
            ids_r = row_off + lax.broadcasted_iota(jnp.int32, (tm, 1), 0)
            ids_c = col_off + lax.broadcasted_iota(jnp.int32, (1, tn), 1)
            not_diag = ids_r != ids_c                                   # (tm, tn) bool
            if pad > 0:
                col_valid = ids_c < n_real                              # (1, tn) bool
                keep = jnp.logical_and(not_diag, col_valid)
                sim_for_max = jnp.where(col_valid, sim, f32(-3e38))
            else:
                # pad is Python-static: no padded columns exist, drop col_valid entirely.
                keep = not_diag
                sim_for_max = sim
        else:
            keep = None                                                 # fast path: no masks
            sim_for_max = sim

        if assume_normalized:
            # Caller guarantees ||hs_i|| == 1  =>  sim <= 1, constant max is safe.
            m_new = f32(1.0)
        else:
            m_old = m_s[...]
            m_new = jnp.maximum(m_old, jnp.max(sim_for_max, axis=1, keepdims=True))
            m_s[...] = m_new

        def exp_sum(inv_t):
            e = jnp.exp((sim - m_new) * inv_t)
            if keep is not None:
                e = jnp.where(keep, e, f32(0.0))
            return jnp.sum(e, axis=1, keepdims=True)

        if assume_normalized:
            l_y_s[...] += exp_sum(inv_ty)
            if not share_stats:
                l_g_s[...] += exp_sum(inv_tg)
        else:
            l_y_s[...] = (l_y_s[...] * jnp.exp((m_old - m_new) * inv_ty) + exp_sum(inv_ty))
            if not share_stats:
                l_g_s[...] = (l_g_s[...] * jnp.exp((m_old - m_new) * inv_tg) + exp_sum(inv_tg))

        pos_y = eq_y if keep is None else jnp.logical_and(eq_y, keep)
        pos_g = eq_g if keep is None else jnp.logical_and(eq_g, keep)
        # Boolean masks with fused selects (no astype + mask-multiply chains).
        spos_y_s[...] += jnp.sum(jnp.where(pos_y, sim, f32(0.0)), axis=1, keepdims=True)
        cnt_y_s[...] += jnp.sum(jnp.where(pos_y, f32(1.0), f32(0.0)), axis=1, keepdims=True)
        spos_g_s[...] += jnp.sum(jnp.where(pos_g, sim, f32(0.0)), axis=1, keepdims=True)
        cnt_g_s[...] += jnp.sum(jnp.where(pos_g, f32(1.0), f32(0.0)), axis=1, keepdims=True)

    # Only tiles touching the self-contrast diagonal (and, when the batch is padded, the
    # last column block) need the exclusion masks; everything else takes the cheap path.
    needs_mask = jnp.logical_and(row_off < col_off + tn, col_off < row_off + tm)
    if pad > 0:
        needs_mask = jnp.logical_or(needs_mask, j == n_col_blocks - 1)

    @pl.when(needs_mask)
    def _masked_path():
        accumulate(True)

    @pl.when(jnp.logical_not(needs_mask))
    def _fast_path():
        accumulate(False)

    @pl.when(j == n_col_blocks - 1)
    def _finalize():
        m = f32(1.0) if assume_normalized else m_s[...]
        # 1e-30 clamp only guards true underflow of the denominator (extreme temperatures).
        log_l_y = jnp.log(jnp.maximum(l_y_s[...], f32(1e-30)))
        log_l_g = log_l_y if share_stats else jnp.log(jnp.maximum(l_g_s[...], f32(1e-30)))
        cy = cnt_y_s[...]
        cg = cnt_g_s[...]
        # sum(mask*log_prob) = (sum(mask*sim) - count*max)/T - count*log(denominator)
        sum_lp_y = (spos_y_s[...] - cy * m) * inv_ty - cy * log_l_y
        sum_lp_g = (spos_g_s[...] - cg * m) * inv_tg - cg * log_l_g
        # NOTE: anchors with no positives contribute 0 here (the PyTorch reference NaNs).
        mlpp_y = sum_lp_y / jnp.maximum(cy, f32(1.0))
        mlpp_g = sum_lp_g / jnp.maximum(cg, f32(1.0))
        loss_y = -(temperature_y / base_temperature_y) * mlpp_y
        loss_g = -(temperature_g / base_temperature_g) * mlpp_g
        combined = f32(fcl_lambda_y) * loss_y - f32(fcl_lambda_g) * loss_g
        if pad > 0:
            rvalid = (row_off + lax.broadcasted_iota(jnp.int32, (tm, 1), 0)) < n_real
            combined = jnp.where(rvalid, combined, f32(0.0))
        out_ref[...] = combined


def _vmem_capacity_bytes():
    try:
        info = pltpu.get_tpu_info()
        cap = getattr(info, "vmem_capacity_bytes", None)
        if cap:
            return int(cap)
    except Exception:
        pass
    return 64 * 1024 * 1024   # conservative (v7x-sized) fallback


def fair_contrastive_loss(hs, tags, p_tags, *, FCLObj="g",
                          fcl_temperature_y=0.01, fcl_base_temperature_y=0.01,
                          fcl_temperature_g=0.01, fcl_base_temperature_g=0.01,
                          fcl_lambda_y=0.1, fcl_lambda_g=0.1,
                          assume_normalized=False,
                          tile_m=None, tile_n=None):
    """Pallas implementation of Fair_Contrastive_Loss.forward (FCLObj == 'g')."""
    if FCLObj != "g":
        # TODO(synk): 'EO' branch needs data-dependent per-group sub-batching
        # (Python loop over set(tags) + gather); only the 'g' objective is implemented.
        raise NotImplementedError("Only FCLObj == 'g' is implemented.")

    n, d = hs.shape
    itemsize = jnp.dtype(hs.dtype).itemsize
    d_p = _round_up(d, 128)     # keep the MXU contraction dim / lane axis aligned

    # Generation-aware tiling: v5e/v6e have 128 MiB VMEM, v7x only 64 MiB per TensorCore.
    big_vmem = _vmem_capacity_bytes() >= 96 * 1024 * 1024
    if big_vmem:
        budget, vmem_limit, tm_max, two_core_hint = 48 << 20, 96 << 20, 1024, False
    else:
        budget, vmem_limit, tm_max, two_core_hint = 22 << 20, 40 << 20, 512, True

    def footprint(tm_, tn_):
        # double-buffered input tiles + headroom for ~6 live (tm, tn) f32 temporaries
        return 2 * (tm_ * d_p + d_p * tn_) * itemsize + 6 * tm_ * tn_ * 4

    if tile_n is not None:
        tn = int(tile_n)
    else:
        tn = min(512, _round_up(n, 128))
        while tn > 128 and footprint(8, tn) > budget:
            tn -= 128
    np_ = _round_up(n, tn)

    if tile_m is not None:
        tm = int(tile_m)
    else:
        tm = min(tm_max, np_)
        while tm > 8 and (np_ % tm != 0 or footprint(tm, tn) > budget):
            tm -= 8
        # Keep grid[0] even so the "parallel" row axis load-balances across 2 TCs (v7x).
        if two_core_hint and (np_ // tm) % 2 == 1 and tm % 16 == 0:
            tm //= 2

    pad_n = np_ - n
    pad_d = d_p - d
    hs_p = jnp.pad(hs, ((0, pad_n), (0, pad_d))) if (pad_n or pad_d) else hs
    hst = hs_p.T     # one-time XLA transpose; the MXU then sees a natural (tm,d)@(d,tn)

    tags_i = jnp.asarray(tags, jnp.int32)
    ptags_i = jnp.asarray(p_tags, jnp.int32)
    if pad_n:
        tags_i = jnp.pad(tags_i, (0, pad_n), constant_values=-1)
        ptags_i = jnp.pad(ptags_i, (0, pad_n), constant_values=-1)
    lab_rows = jnp.stack([tags_i, ptags_i], axis=1)    # (Np, 2) anchor labels (sublane)
    lab_cols = jnp.stack([tags_i, ptags_i], axis=0)    # (2, Np) contrast labels (lane)

    share_stats = float(fcl_temperature_y) == float(fcl_temperature_g)
    kernel = functools.partial(
        _fcl_tile_kernel,
        n_real=n, pad=pad_n, tm=tm, tn=tn,
        temperature_y=float(fcl_temperature_y),
        base_temperature_y=float(fcl_base_temperature_y),
        temperature_g=float(fcl_temperature_g),
        base_temperature_g=float(fcl_base_temperature_g),
        fcl_lambda_y=float(fcl_lambda_y),
        fcl_lambda_g=float(fcl_lambda_g),
        share_stats=share_stats,
        assume_normalized=bool(assume_normalized))

    grid = (np_ // tm, np_ // tn)
    cost = pl.CostEstimate(
        flops=2 * np_ * np_ * d_p,
        transcendentals=np_ * np_ * (1 if share_stats else 2),
        bytes_accessed=(np_ * d_p * itemsize               # anchor rows: resident across j
                        + grid[0] * np_ * d_p * itemsize   # contrast cols: re-streamed per row block
                        + grid[0] * 2 * np_ * 4            # contrast labels per row block
                        + np_ * (2 * 4 + 4)))              # anchor labels + per-anchor output

    # TODO(synk): on v5e a pipeline_mode=pl.Buffered(3) on the contrast-tile spec would hide
    # more of its DMA latency; left at the default double buffer for portability.
    per_anchor = pl.pallas_call(
        kernel,
        out_shape=jax.ShapeDtypeStruct((np_, 1), jnp.float32),
        grid_spec=pltpu.PrefetchScalarGridSpec(
            num_scalar_prefetch=0,
            grid=grid,
            in_specs=[
                pl.BlockSpec((tm, d_p), lambda i, j: (i, 0)),    # anchor rows of hs
                pl.BlockSpec((d_p, tn), lambda i, j: (0, j)),    # contrast cols of hs.T
                pl.BlockSpec((tm, 2), lambda i, j: (i, 0)),      # anchor labels
                pl.BlockSpec((2, tn), lambda i, j: (0, j)),      # contrast labels
            ],
            out_specs=pl.BlockSpec((tm, 1), lambda i, j: (i, 0)),
            scratch_shapes=[pltpu.VMEM((tm, 1), jnp.float32)] * 7),
        compiler_params=pltpu.CompilerParams(
            dimension_semantics=("parallel", "arbitrary"),
            vmem_limit_bytes=vmem_limit),
        cost_estimate=cost,
    )(hs_p, hst, lab_rows, lab_cols)

    # Tiny final reduction: mean over the real anchors (padded rows are exact zeros).
    return jnp.sum(per_anchor[:n, 0]) / n


def _reference(hs, tags, p_tags, *, ty, bty, tg, btg, ly, lg):
    """Pure-JAX reference mirroring the PyTorch forward (FCLObj == 'g')."""
    def supcon(feats, labels, temp, base_temp):
        n = feats.shape[0]
        mask = (labels[:, None] == labels[None, :]).astype(jnp.float32)
        adc = (feats @ feats.T) / temp
        logits = adc - jnp.max(adc, axis=1, keepdims=True)
        logits_mask = 1.0 - jnp.eye(n, dtype=jnp.float32)
        mask = mask * logits_mask
        exp_logits = jnp.exp(logits) * logits_mask
        log_prob = logits - jnp.log(jnp.sum(exp_logits, axis=1, keepdims=True))
        mlpp = jnp.sum(mask * log_prob, axis=1) / jnp.sum(mask, axis=1)
        return jnp.mean(-(temp / base_temp) * mlpp)

    return ly * supcon(hs, tags, ty, bty) - lg * supcon(hs, p_tags, tg, btg)


if __name__ == "__main__":
    def make_inputs(n, d, key):
        hs = jax.random.normal(key, (n, d), dtype=jnp.float32)
        # L2-normalize (as the FCL encoder does) so the contrastive softmax is well
        # conditioned and the reference is finite.
        hs = hs / jnp.linalg.norm(hs, axis=1, keepdims=True)
        tags = (jnp.arange(n) % 4).astype(jnp.int32)        # every class has >= 2 members
        p_tags = ((jnp.arange(n) // 2) % 3).astype(jnp.int32)
        return hs, tags, p_tags

    def ref_of(hs, tags, p_tags, cfg):
        return _reference(hs, tags, p_tags,
                          ty=cfg["fcl_temperature_y"], bty=cfg["fcl_base_temperature_y"],
                          tg=cfg["fcl_temperature_g"], btg=cfg["fcl_base_temperature_g"],
                          ly=cfg["fcl_lambda_y"], lg=cfg["fcl_lambda_g"])

    def check(loss, ref, name):
        assert bool(jnp.isfinite(ref)), (name, ref)
        assert jnp.allclose(loss, ref, rtol=2e-3, atol=2e-3), (name, loss, ref)

    cfg_shared = dict(fcl_temperature_y=0.1, fcl_base_temperature_y=0.1,
                      fcl_temperature_g=0.1, fcl_base_temperature_g=0.1,
                      fcl_lambda_y=0.1, fcl_lambda_g=0.1)
    cfg_mixed = dict(fcl_temperature_y=0.1, fcl_base_temperature_y=0.1,
                     fcl_temperature_g=0.2, fcl_base_temperature_g=0.2,
                     fcl_lambda_y=0.1, fcl_lambda_g=0.1)

    hs8, t8, p8 = make_inputs(8, 32, jax.random.PRNGKey(0))

    # case 1: tiny batch, shared temperatures (shared softmax-statistics path)
    l1 = jax.block_until_ready(fair_contrastive_loss(hs8, t8, p8, FCLObj="g", **cfg_shared))
    check(l1, ref_of(hs8, t8, p8, cfg_shared), "case1")

    # case 2: different temperatures (separate denominators path)
    l2 = jax.block_until_ready(fair_contrastive_loss(hs8, t8, p8, FCLObj="g", **cfg_mixed))
    check(l2, ref_of(hs8, t8, p8, cfg_mixed), "case2")

    # case 3: assumption-gated constant-max path (features are L2-normalized above)
    l3 = jax.block_until_ready(fair_contrastive_loss(hs8, t8, p8, FCLObj="g",
                                                     assume_normalized=True, **cfg_shared))
    check(l3, ref_of(hs8, t8, p8, cfg_shared), "case3")

    # case 4: multi-tile grid with padding -> exercises masked (diagonal/padded) tiles
    # AND the unmasked fast-path tile, with separate denominators.
    hs4, t4, p4 = make_inputs(250, 32, jax.random.PRNGKey(1))
    l4 = jax.block_until_ready(fair_contrastive_loss(hs4, t4, p4, FCLObj="g",
                                                     tile_m=128, tile_n=128, **cfg_mixed))
    check(l4, ref_of(hs4, t4, p4, cfg_mixed), "case4")

    # case 5: multi-tile grid with no padding (pad==0 trace-time fast path), shared temps.
    hs5, t5, p5 = make_inputs(256, 32, jax.random.PRNGKey(2))
    l5 = jax.block_until_ready(fair_contrastive_loss(hs5, t5, p5, FCLObj="g",
                                                     tile_m=128, tile_n=128, **cfg_shared))
    check(l5, ref_of(hs5, t5, p5, cfg_shared), "case5")

    print("KERNEL_OK")
</pallas_src>

<mosaic_0001>
module attributes {stable_mosaic.version = 11 : i64} {
  func.func @_fcl_tile_kernel(%arg0: i32, %arg1: i32, %arg2: memref<64x128xf32, #tpu.memory_space<vmem>>, %arg3: memref<128x128xf32, #tpu.memory_space<vmem>>, %arg4: memref<64x2xi32, #tpu.memory_space<vmem>>, %arg5: memref<2x128xi32, #tpu.memory_space<vmem>>, %arg6: memref<64x1xf32, #tpu.memory_space<vmem>>, %arg7: memref<64x1xf32, #tpu.memory_space<vmem>>, %arg8: memref<64x1xf32, #tpu.memory_space<vmem>>, %arg9: memref<64x1xf32, #tpu.memory_space<vmem>>, %arg10: memref<64x1xf32, #tpu.memory_space<vmem>>, %arg11: memref<64x1xf32, #tpu.memory_space<vmem>>, %arg12: memref<64x1xf32, #tpu.memory_space<vmem>>, %arg13: memref<64x1xf32, #tpu.memory_space<vmem>>) attributes {dimension_semantics = [#tpu.dimension_semantics<parallel>, #tpu.dimension_semantics<arbitrary>], iteration_bounds = array<i64: 2, 1>, scalar_prefetch = 0 : i64, scratch_operands = 7 : i64, tpu.core_type = #tpu.core_type<tc>, window_params = [{transform_indices = @transform_0, window_bounds = array<i64: 64, 128>}, {transform_indices = @transform_1, window_bounds = array<i64: 128, 128>}, {transform_indices = @transform_2, window_bounds = array<i64: 64, 2>}, {transform_indices = @transform_3, window_bounds = array<i64: 2, 128>}, {transform_indices = @transform_4, window_bounds = array<i64: 64, 1>}]} {
    %c64_i32 = arith.constant 64 : i32
    %0 = arith.muli %arg0, %c64_i32 : i32
    %c128_i32 = arith.constant 128 : i32
    %1 = arith.muli %arg1, %c128_i32 : i32
    %c0_i32 = arith.constant 0 : i32
    %2 = arith.cmpi eq, %arg1, %c0_i32 : i32
    %3 = arith.extui %2 : i1 to i32
    %c0_i32_0 = arith.constant 0 : i32
    %4 = arith.cmpi ne, %3, %c0_i32_0 : i32
    scf.if %4 {
      %cst_22 = arith.constant -1.000000e+30 : f32
      %33 = vector.broadcast %cst_22 : f32 to vector<64x1xf32>
      %c0_23 = arith.constant 0 : index
      %c0_24 = arith.constant 0 : index
      %34 = vector.load %arg7[%c0_23, %c0_24] : memref<64x1xf32, #tpu.memory_space<vmem>>, vector<64x1xf32>
      tpu.vector_store %arg7[%c0_23, %c0_24], %33 {strides = array<i32>} : memref<64x1xf32, #tpu.memory_space<vmem>>, vector<64x1xf32>,
      %cst_25 = arith.constant 0.000000e+00 : f32
      %35 = vector.broadcast %cst_25 : f32 to vector<64x1xf32>
      %c0_26 = arith.constant 0 : index
      %c0_27 = arith.constant 0 : index
      %36 = vector.load %arg8[%c0_26, %c0_27] : memref<64x1xf32, #tpu.memory_space<vmem>>, vector<64x1xf32>
      tpu.vector_store %arg8[%c0_26, %c0_27], %35 {strides = array<i32>} : memref<64x1xf32, #tpu.memory_space<vmem>>, vector<64x1xf32>,
      %cst_28 = arith.constant 0.000000e+00 : f32
      %37 = vector.broadcast %cst_28 : f32 to vector<64x1xf32>
      %c0_29 = arith.constant 0 : index
      %c0_30 = arith.constant 0 : index
      %38 = vector.load %arg9[%c0_29, %c0_30] : memref<64x1xf32, #tpu.memory_space<vmem>>, vector<64x1xf32>
      tpu.vector_store %arg9[%c0_29, %c0_30], %37 {strides = array<i32>} : memref<64x1xf32, #tpu.memory_space<vmem>>, vector<64x1xf32>,
      %cst_31 = arith.constant 0.000000e+00 : f32
      %39 = vector.broadcast %cst_31 : f32 to vector<64x1xf32>
      %c0_32 = arith.constant 0 : index
      %c0_33 = arith.constant 0 : index
      %40 = vector.load %arg10[%c0_32, %c0_33] : memref<64x1xf32, #tpu.memory_space<vmem>>, vector<64x1xf32>
      tpu.vector_store %arg10[%c0_32, %c0_33], %39 {strides = array<i32>} : memref<64x1xf32, #tpu.memory_space<vmem>>, vector<64x1xf32>,
      %cst_34 = arith.constant 0.000000e+00 : f32
      %41 = vector.broadcast %cst_34 : f32 to vector<64x1xf32>
      %c0_35 = arith.constant 0 : index
      %c0_36 = arith.constant 0 : index
      %42 = vector.load %arg11[%c0_35, %c0_36] : memref<64x1xf32, #tpu.memory_space<vmem>>, vector<64x1xf32>
      tpu.vector_store %arg11[%c0_35, %c0_36], %41 {strides = array<i32>} : memref<64x1xf32, #tpu.memory_space<vmem>>, vector<64x1xf32>,
      %cst_37 = arith.constant 0.000000e+00 : f32
      %43 = vector.broadcast %cst_37 : f32 to vector<64x1xf32>
      %c0_38 = arith.constant 0 : index
      %c0_39 = arith.constant 0 : index
      %44 = vector.load %arg12[%c0_38, %c0_39] : memref<64x1xf32, #tpu.memory_space<vmem>>, vector<64x1xf32>
      tpu.vector_store %arg12[%c0_38, %c0_39], %43 {strides = array<i32>} : memref<64x1xf32, #tpu.memory_space<vmem>>, vector<64x1xf32>,
      %cst_40 = arith.constant 0.000000e+00 : f32
      %45 = vector.broadcast %cst_40 : f32 to vector<64x1xf32>
      %c0_41 = arith.constant 0 : index
      %c0_42 = arith.constant 0 : index
      %46 = vector.load %arg13[%c0_41, %c0_42] : memref<64x1xf32, #tpu.memory_space<vmem>>, vector<64x1xf32>
      tpu.vector_store %arg13[%c0_41, %c0_42], %45 {strides = array<i32>} : memref<64x1xf32, #tpu.memory_space<vmem>>, vector<64x1xf32>,
    } else {
    }
    %c0 = arith.constant 0 : index
    %c0_1 = arith.constant 0 : index
    %5 = vector.load %arg2[%c0, %c0_1] : memref<64x128xf32, #tpu.memory_space<vmem>>, vector<64x128xf32>
    %c0_2 = arith.constant 0 : index
    %c0_3 = arith.constant 0 : index
    %6 = vector.load %arg3[%c0_2, %c0_3] : memref<128x128xf32, #tpu.memory_space<vmem>>, vector<128x128xf32>
    %cst = arith.constant dense<0.000000e+00> : vector<64x128xf32>
    %7 = tpu.matmul %5, %6, %cst {dimension_numbers = #tpu.dot_dimension_numbers<[1], [0], [0], [1], [0, 0, 1, 1], [], []>} : vector<64x128xf32>, vector<128x128xf32>, vector<64x128xf32> -> vector<64x128xf32>
    %c0_4 = arith.constant 0 : index
    %c0_5 = arith.constant 0 : index
    %8 = vector.load %arg4[%c0_4, %c0_5] : memref<64x2xi32, #tpu.memory_space<vmem>>, vector<64x1xi32>
    %c0_6 = arith.constant 0 : index
    %c1 = arith.constant 1 : index
    %9 = vector.load %arg4[%c0_6, %c1] : memref<64x2xi32, #tpu.memory_space<vmem>>, vector<64x1xi32>
    %c0_7 = arith.constant 0 : index
    %c0_8 = arith.constant 0 : index
    %10 = vector.load %arg5[%c0_7, %c0_8] : memref<2x128xi32, #tpu.memory_space<vmem>>, vector<1x128xi32>
    %c1_9 = arith.constant 1 : index
    %c0_10 = arith.constant 0 : index
    %11 = vector.load %arg5[%c1_9, %c0_10] : memref<2x128xi32, #tpu.memory_space<vmem>>, vector<1x128xi32>
    %12 = vector.broadcast %8 : vector<64x1xi32> to vector<64x128xi32>
    %13 = vector.broadcast %10 : vector<1x128xi32> to vector<64x128xi32>
    %14 = arith.cmpi eq, %12, %13 : vector<64x128xi32>
    %15 = vector.broadcast %9 : vector<64x1xi32> to vector<64x128xi32>
    %16 = vector.broadcast %11 : vector<1x128xi32> to vector<64x128xi32>
    %17 = arith.cmpi eq, %15, %16 : vector<64x128xi32>
    %c128_i32_11 = arith.constant 128 : i32
    %18 = arith.addi %1, %c128_i32_11 : i32
    %19 = arith.cmpi slt, %0, %18 : i32
    %c64_i32_12 = arith.constant 64 : i32
    %20 = arith.addi %0, %c64_i32_12 : i32
    %21 = arith.cmpi slt, %1, %20 : i32
    %22 = arith.andi %19, %21 : i1
    %c0_i32_13 = arith.constant 0 : i32
    %23 = arith.cmpi eq, %arg1, %c0_i32_13 : i32
    %24 = arith.ori %22, %23 : i1
    %25 = arith.extui %24 : i1 to i32
    %cst_14 = arith.constant 1.000000e+01 : f32
    %c0_i32_15 = arith.constant 0 : i32
    %26 = arith.cmpi ne, %25, %c0_i32_15 : i32
    scf.if %26 {
      %33 = tpu.iota {dimensions = array<i32: 0>} : vector<64x1xi32>
      %34 = vector.broadcast %0 : i32 to vector<64x1xi32>
      %35 = arith.addi %34, %33 : vector<64x1xi32>
      %36 = tpu.iota {dimensions = array<i32: 1>} : vector<1x128xi32>
      %37 = vector.broadcast %1 : i32 to vector<1x128xi32>
      %38 = arith.addi %37, %36 : vector<1x128xi32>
      %39 = vector.broadcast %35 : vector<64x1xi32> to vector<64x128xi32>
      %40 = vector.broadcast %38 : vector<1x128xi32> to vector<64x128xi32>
      %41 = arith.cmpi ne, %39, %40 : vector<64x128xi32>
      %c8_i32 = arith.constant 8 : i32
      %42 = vector.broadcast %c8_i32 : i32 to vector<1x128xi32>
      %43 = arith.cmpi slt, %38, %42 : vector<1x128xi32>
      %44 = vector.broadcast %43 : vector<1x128xi1> to vector<64x128xi1>
      %45 = arith.andi %41, %44 : vector<64x128xi1>
      %cst_22 = arith.constant -3.000000e+38 : f32
      %46 = vector.shape_cast %43 : vector<1x128xi1> to vector<1x128xi1>
      %47 = vector.broadcast %46 : vector<1x128xi1> to vector<64x128xi1>
      %48 = vector.broadcast %cst_22 : f32 to vector<64x128xf32>
      %49 = arith.select %47, %7, %48 : vector<64x128xi1>, vector<64x128xf32>
      %c0_23 = arith.constant 0 : index
      %c0_24 = arith.constant 0 : index
      %50 = vector.load %arg7[%c0_23, %c0_24] : memref<64x1xf32, #tpu.memory_space<vmem>>, vector<64x1xf32>
      %cst_25 = arith.constant dense<0xFF800000> : vector<64xf32>
      %51 = vector.multi_reduction <maximumf>, %49, %cst_25 [1] : vector<64x128xf32> to vector<64xf32>
      %52 = vector.shape_cast %51 : vector<64xf32> to vector<64x1xf32>
      %53 = arith.maximumf %50, %52 : vector<64x1xf32>
      %c0_26 = arith.constant 0 : index
      %c0_27 = arith.constant 0 : index
      %54 = vector.load %arg7[%c0_26, %c0_27] : memref<64x1xf32, #tpu.memory_space<vmem>>, vector<64x1xf32>
      tpu.vector_store %arg7[%c0_26, %c0_27], %53 {strides = array<i32>} : memref<64x1xf32, #tpu.memory_space<vmem>>, vector<64x1xf32>,
      %c0_28 = arith.constant 0 : index
      %c0_29 = arith.constant 0 : index
      %55 = vector.load %arg8[%c0_28, %c0_29] : memref<64x1xf32, #tpu.memory_space<vmem>>, vector<64x1xf32>
      %56 = arith.subf %50, %53 : vector<64x1xf32>
      %57 = vector.broadcast %cst_14 : f32 to vector<64x1xf32>
      %58 = arith.mulf %56, %57 : vector<64x1xf32>
      %59 = math.exp %58 : vector<64x1xf32>
      %60 = arith.mulf %55, %59 : vector<64x1xf32>
      %61 = vector.broadcast %53 : vector<64x1xf32> to vector<64x128xf32>
      %62 = arith.subf %7, %61 : vector<64x128xf32>
      %63 = vector.broadcast %cst_14 : f32 to vector<64x128xf32>
      %64 = arith.mulf %62, %63 : vector<64x128xf32>
      %65 = math.exp %64 : vector<64x128xf32>
      %cst_30 = arith.constant 0.000000e+00 : f32
      %66 = vector.broadcast %cst_30 : f32 to vector<64x128xf32>
      %67 = arith.select %45, %65, %66 : vector<64x128xi1>, vector<64x128xf32>
      %cst_31 = arith.constant dense<0.000000e+00> : vector<64xf32>
      %68 = vector.multi_reduction <add>, %67, %cst_31 [1] : vector<64x128xf32> to vector<64xf32>
      %69 = vector.shape_cast %68 : vector<64xf32> to vector<64x1xf32>
      %70 = arith.addf %60, %69 : vector<64x1xf32>
      %c0_32 = arith.constant 0 : index
      %c0_33 = arith.constant 0 : index
      %71 = vector.load %arg8[%c0_32, %c0_33] : memref<64x1xf32, #tpu.memory_space<vmem>>, vector<64x1xf32>
      tpu.vector_store %arg8[%c0_32, %c0_33], %70 {strides = array<i32>} : memref<64x1xf32, #tpu.memory_space<vmem>>, vector<64x1xf32>,
      %72 = arith.andi %14, %45 : vector<64x128xi1>
      %73 = arith.andi %17, %45 : vector<64x128xi1>
      %c0_34 = arith.constant 0 : index
      %c0_35 = arith.constant 0 : index
      %74 = vector.load %arg10[%c0_34, %c0_35] : memref<64x1xf32, #tpu.memory_space<vmem>>, vector<64x1xf32>
      %cst_36 = arith.constant 0.000000e+00 : f32
      %75 = vector.broadcast %cst_36 : f32 to vector<64x128xf32>
      %76 = arith.select %72, %7, %75 : vector<64x128xi1>, vector<64x128xf32>
      %cst_37 = arith.constant dense<0.000000e+00> : vector<64xf32>
      %77 = vector.multi_reduction <add>, %76, %cst_37 [1] : vector<64x128xf32> to vector<64xf32>
      %78 = vector.shape_cast %77 : vector<64xf32> to vector<64x1xf32>
      %79 = arith.addf %74, %78 : vector<64x1xf32>
      %c0_38 = arith.constant 0 : index
      %c0_39 = arith.constant 0 : index
      %80 = vector.load %arg10[%c0_38, %c0_39] : memref<64x1xf32, #tpu.memory_space<vmem>>, vector<64x1xf32>
      tpu.vector_store %arg10[%c0_38, %c0_39], %79 {strides = array<i32>} : memref<64x1xf32, #tpu.memory_space<vmem>>, vector<64x1xf32>,
      %c0_40 = arith.constant 0 : index
      %c0_41 = arith.constant 0 : index
      %81 = vector.load %arg11[%c0_40, %c0_41] : memref<64x1xf32, #tpu.memory_space<vmem>>, vector<64x1xf32>
      %cst_42 = arith.constant 1.000000e+00 : f32
      %cst_43 = arith.constant 0.000000e+00 : f32
      %82 = vector.broadcast %cst_42 : f32 to vector<64x128xf32>
      %83 = vector.broadcast %cst_43 : f32 to vector<64x128xf32>
      %84 = arith.select %72, %82, %83 : vector<64x128xi1>, vector<64x128xf32>
      %cst_44 = arith.constant dense<0.000000e+00> : vector<64xf32>
      %85 = vector.multi_reduction <add>, %84, %cst_44 [1] : vector<64x128xf32> to vector<64xf32>
      %86 = vector.shape_cast %85 : vector<64xf32> to vector<64x1xf32>
      %87 = arith.addf %81, %86 : vector<64x1xf32>
      %c0_45 = arith.constant 0 : index
      %c0_46 = arith.constant 0 : index
      %88 = vector.load %arg11[%c0_45, %c0_46] : memref<64x1xf32, #tpu.memory_space<vmem>>, vector<64x1xf32>
      tpu.vector_store %arg11[%c0_45, %c0_46], %87 {strides = array<i32>} : memref<64x1xf32, #tpu.memory_space<vmem>>, vector<64x1xf32>,
      %c0_47 = arith.constant 0 : index
      %c0_48 = arith.constant 0 : index
      %89 = vector.load %arg12[%c0_47, %c0_48] : memref<64x1xf32, #tpu.memory_space<vmem>>, vector<64x1xf32>
      %cst_49 = arith.constant 0.000000e+00 : f32
      %90 = vector.broadcast %cst_49 : f32 to vector<64x128xf32>
      %91 = arith.select %73, %7, %90 : vector<64x128xi1>, vector<64x128xf32>
      %cst_50 = arith.constant dense<0.000000e+00> : vector<64xf32>
      %92 = vector.multi_reduction <add>, %91, %cst_50 [1] : vector<64x128xf32> to vector<64xf32>
      %93 = vector.shape_cast %92 : vector<64xf32> to vector<64x1xf32>
      %94 = arith.addf %89, %93 : vector<64x1xf32>
      %c0_51 = arith.constant 0 : index
      %c0_52 = arith.constant 0 : index
      %95 = vector.load %arg12[%c0_51, %c0_52] : memref<64x1xf32, #tpu.memory_space<vmem>>, vector<64x1xf32>
      tpu.vector_store %arg12[%c0_51, %c0_52], %94 {strides = array<i32>} : memref<64x1xf32, #tpu.memory_space<vmem>>, vector<64x1xf32>,
      %c0_53 = arith.constant 0 : index
      %c0_54 = arith.constant 0 : index
      %96 = vector.load %arg13[%c0_53, %c0_54] : memref<64x1xf32, #tpu.memory_space<vmem>>, vector<64x1xf32>
      %cst_55 = arith.constant 1.000000e+00 : f32
      %cst_56 = arith.constant 0.000000e+00 : f32
      %97 = vector.broadcast %cst_55 : f32 to vector<64x128xf32>
      %98 = vector.broadcast %cst_56 : f32 to vector<64x128xf32>
      %99 = arith.select %73, %97, %98 : vector<64x128xi1>, vector<64x128xf32>
      %cst_57 = arith.constant dense<0.000000e+00> : vector<64xf32>
      %100 = vector.multi_reduction <add>, %99, %cst_57 [1] : vector<64x128xf32> to vector<64xf32>
      %101 = vector.shape_cast %100 : vector<64xf32> to vector<64x1xf32>
      %102 = arith.addf %96, %101 : vector<64x1xf32>
      %c0_58 = arith.constant 0 : index
      %c0_59 = arith.constant 0 : index
      %103 = vector.load %arg13[%c0_58, %c0_59] : memref<64x1xf32, #tpu.memory_space<vmem>>, vector<64x1xf32>
      tpu.vector_store %arg13[%c0_58, %c0_59], %102 {strides = array<i32>} : memref<64x1xf32, #tpu.memory_space<vmem>>, vector<64x1xf32>,
    } else {
    }
    %true = arith.constant true
    %27 = arith.xori %24, %true : i1
    %28 = arith.extui %27 : i1 to i32
    %cst_16 = arith.constant 1.000000e+01 : f32
    %c0_i32_17 = arith.constant 0 : i32
    %29 = arith.cmpi ne, %28, %c0_i32_17 : i32
    scf.if %29 {
      %c0_22 = arith.constant 0 : index
      %c0_23 = arith.constant 0 : index
      %33 = vector.load %arg7[%c0_22, %c0_23] : memref<64x1xf32, #tpu.memory_space<vmem>>, vector<64x1xf32>
      %cst_24 = arith.constant dense<0xFF800000> : vector<64xf32>
      %34 = vector.multi_reduction <maximumf>, %7, %cst_24 [1] : vector<64x128xf32> to vector<64xf32>
      %35 = vector.shape_cast %34 : vector<64xf32> to vector<64x1xf32>
      %36 = arith.maximumf %33, %35 : vector<64x1xf32>
      %c0_25 = arith.constant 0 : index
      %c0_26 = arith.constant 0 : index
      %37 = vector.load %arg7[%c0_25, %c0_26] : memref<64x1xf32, #tpu.memory_space<vmem>>, vector<64x1xf32>
      tpu.vector_store %arg7[%c0_25, %c0_26], %36 {strides = array<i32>} : memref<64x1xf32, #tpu.memory_space<vmem>>, vector<64x1xf32>,
      %c0_27 = arith.constant 0 : index
      %c0_28 = arith.constant 0 : index
      %38 = vector.load %arg8[%c0_27, %c0_28] : memref<64x1xf32, #tpu.memory_space<vmem>>, vector<64x1xf32>
      %39 = arith.subf %33, %36 : vector<64x1xf32>
      %40 = vector.broadcast %cst_16 : f32 to vector<64x1xf32>
      %41 = arith.mulf %39, %40 : vector<64x1xf32>
      %42 = math.exp %41 : vector<64x1xf32>
      %43 = arith.mulf %38, %42 : vector<64x1xf32>
      %44 = vector.broadcast %36 : vector<64x1xf32> to vector<64x128xf32>
      %45 = arith.subf %7, %44 : vector<64x128xf32>
      %46 = vector.broadcast %cst_16 : f32 to vector<64x128xf32>
      %47 = arith.mulf %45, %46 : vector<64x128xf32>
      %48 = math.exp %47 : vector<64x128xf32>
      %cst_29 = arith.constant dense<0.000000e+00> : vector<64xf32>
      %49 = vector.multi_reduction <add>, %48, %cst_29 [1] : vector<64x128xf32> to vector<64xf32>
      %50 = vector.shape_cast %49 : vector<64xf32> to vector<64x1xf32>
      %51 = arith.addf %43, %50 : vector<64x1xf32>
      %c0_30 = arith.constant 0 : index
      %c0_31 = arith.constant 0 : index
      %52 = vector.load %arg8[%c0_30, %c0_31] : memref<64x1xf32, #tpu.memory_space<vmem>>, vector<64x1xf32>
      tpu.vector_store %arg8[%c0_30, %c0_31], %51 {strides = array<i32>} : memref<64x1xf32, #tpu.memory_space<vmem>>, vector<64x1xf32>,
      %c0_32 = arith.constant 0 : index
      %c0_33 = arith.constant 0 : index
      %53 = vector.load %arg10[%c0_32, %c0_33] : memref<64x1xf32, #tpu.memory_space<vmem>>, vector<64x1xf32>
      %cst_34 = arith.constant 0.000000e+00 : f32
      %54 = vector.broadcast %cst_34 : f32 to vector<64x128xf32>
      %55 = arith.select %14, %7, %54 : vector<64x128xi1>, vector<64x128xf32>
      %cst_35 = arith.constant dense<0.000000e+00> : vector<64xf32>
      %56 = vector.multi_reduction <add>, %55, %cst_35 [1] : vector<64x128xf32> to vector<64xf32>
      %57 = vector.shape_cast %56 : vector<64xf32> to vector<64x1xf32>
      %58 = arith.addf %53, %57 : vector<64x1xf32>
      %c0_36 = arith.constant 0 : index
      %c0_37 = arith.constant 0 : index
      %59 = vector.load %arg10[%c0_36, %c0_37] : memref<64x1xf32, #tpu.memory_space<vmem>>, vector<64x1xf32>
      tpu.vector_store %arg10[%c0_36, %c0_37], %58 {strides = array<i32>} : memref<64x1xf32, #tpu.memory_space<vmem>>, vector<64x1xf32>,
      %c0_38 = arith.constant 0 : index
      %c0_39 = arith.constant 0 : index
      %60 = vector.load %arg11[%c0_38, %c0_39] : memref<64x1xf32, #tpu.memory_space<vmem>>, vector<64x1xf32>
      %cst_40 = arith.constant 1.000000e+00 : f32
      %cst_41 = arith.constant 0.000000e+00 : f32
      %61 = vector.broadcast %cst_40 : f32 to vector<64x128xf32>
      %62 = vector.broadcast %cst_41 : f32 to vector<64x128xf32>
      %63 = arith.select %14, %61, %62 : vector<64x128xi1>, vector<64x128xf32>
      %cst_42 = arith.constant dense<0.000000e+00> : vector<64xf32>
      %64 = vector.multi_reduction <add>, %63, %cst_42 [1] : vector<64x128xf32> to vector<64xf32>
      %65 = vector.shape_cast %64 : vector<64xf32> to vector<64x1xf32>
      %66 = arith.addf %60, %65 : vector<64x1xf32>
      %c0_43 = arith.constant 0 : index
      %c0_44 = arith.constant 0 : index
      %67 = vector.load %arg11[%c0_43, %c0_44] : memref<64x1xf32, #tpu.memory_space<vmem>>, vector<64x1xf32>
      tpu.vector_store %arg11[%c0_43, %c0_44], %66 {strides = array<i32>} : memref<64x1xf32, #tpu.memory_space<vmem>>, vector<64x1xf32>,
      %c0_45 = arith.constant 0 : index
      %c0_46 = arith.constant 0 : index
      %68 = vector.load %arg12[%c0_45, %c0_46] : memref<64x1xf32, #tpu.memory_space<vmem>>, vector<64x1xf32>
      %cst_47 = arith.constant 0.000000e+00 : f32
      %69 = vector.broadcast %cst_47 : f32 to vector<64x128xf32>
      %70 = arith.select %17, %7, %69 : vector<64x128xi1>, vector<64x128xf32>
      %cst_48 = arith.constant dense<0.000000e+00> : vector<64xf32>
      %71 = vector.multi_reduction <add>, %70, %cst_48 [1] : vector<64x128xf32> to vector<64xf32>
      %72 = vector.shape_cast %71 : vector<64xf32> to vector<64x1xf32>
      %73 = arith.addf %68, %72 : vector<64x1xf32>
      %c0_49 = arith.constant 0 : index
      %c0_50 = arith.constant 0 : index
      %74 = vector.load %arg12[%c0_49, %c0_50] : memref<64x1xf32, #tpu.memory_space<vmem>>, vector<64x1xf32>
      tpu.vector_store %arg12[%c0_49, %c0_50], %73 {strides = array<i32>} : memref<64x1xf32, #tpu.memory_space<vmem>>, vector<64x1xf32>,
      %c0_51 = arith.constant 0 : index
      %c0_52 = arith.constant 0 : index
      %75 = vector.load %arg13[%c0_51, %c0_52] : memref<64x1xf32, #tpu.memory_space<vmem>>, vector<64x1xf32>
      %cst_53 = arith.constant 1.000000e+00 : f32
      %cst_54 = arith.constant 0.000000e+00 : f32
      %76 = vector.broadcast %cst_53 : f32 to vector<64x128xf32>
      %77 = vector.broadcast %cst_54 : f32 to vector<64x128xf32>
      %78 = arith.select %17, %76, %77 : vector<64x128xi1>, vector<64x128xf32>
      %cst_55 = arith.constant dense<0.000000e+00> : vector<64xf32>
      %79 = vector.multi_reduction <add>, %78, %cst_55 [1] : vector<64x128xf32> to vector<64xf32>
      %80 = vector.shape_cast %79 : vector<64xf32> to vector<64x1xf32>
      %81 = arith.addf %75, %80 : vector<64x1xf32>
      %c0_56 = arith.constant 0 : index
      %c0_57 = arith.constant 0 : index
      %82 = vector.load %arg13[%c0_56, %c0_57] : memref<64x1xf32, #tpu.memory_space<vmem>>, vector<64x1xf32>
      tpu.vector_store %arg13[%c0_56, %c0_57], %81 {strides = array<i32>} : memref<64x1xf32, #tpu.memory_space<vmem>>, vector<64x1xf32>,
    } else {
    }
    %c0_i32_18 = arith.constant 0 : i32
    %30 = arith.cmpi eq, %arg1, %c0_i32_18 : i32
    %31 = arith.extui %30 : i1 to i32
    %cst_19 = arith.constant 1.000000e+01 : f32
    %cst_20 = arith.constant 1.000000e+01 : f32
    %c0_i32_21 = arith.constant 0 : i32
    %32 = arith.cmpi ne, %31, %c0_i32_21 : i32
    scf.if %32 {
      %c0_22 = arith.constant 0 : index
      %c0_23 = arith.constant 0 : index
      %33 = vector.load %arg7[%c0_22, %c0_23] : memref<64x1xf32, #tpu.memory_space<vmem>>, vector<64x1xf32>
      %c0_24 = arith.constant 0 : index
      %c0_25 = arith.constant 0 : index
      %34 = vector.load %arg8[%c0_24, %c0_25] : memref<64x1xf32, #tpu.memory_space<vmem>>, vector<64x1xf32>
      %cst_26 = arith.constant 1.000000e-30 : f32
      %35 = vector.broadcast %cst_26 : f32 to vector<64x1xf32>
      %36 = arith.maximumf %34, %35 : vector<64x1xf32>
      %37 = math.log %36 : vector<64x1xf32>
      %c0_27 = arith.constant 0 : index
      %c0_28 = arith.constant 0 : index
      %38 = vector.load %arg11[%c0_27, %c0_28] : memref<64x1xf32, #tpu.memory_space<vmem>>, vector<64x1xf32>
      %c0_29 = arith.constant 0 : index
      %c0_30 = arith.constant 0 : index
      %39 = vector.load %arg13[%c0_29, %c0_30] : memref<64x1xf32, #tpu.memory_space<vmem>>, vector<64x1xf32>
      %c0_31 = arith.constant 0 : index
      %c0_32 = arith.constant 0 : index
      %40 = vector.load %arg10[%c0_31, %c0_32] : memref<64x1xf32, #tpu.memory_space<vmem>>, vector<64x1xf32>
      %41 = arith.mulf %38, %33 : vector<64x1xf32>
      %42 = arith.subf %40, %41 : vector<64x1xf32>
      %43 = vector.broadcast %cst_19 : f32 to vector<64x1xf32>
      %44 = arith.mulf %42, %43 : vector<64x1xf32>
      %45 = arith.mulf %38, %37 : vector<64x1xf32>
      %46 = arith.subf %44, %45 : vector<64x1xf32>
      %c0_33 = arith.constant 0 : index
      %c0_34 = arith.constant 0 : index
      %47 = vector.load %arg12[%c0_33, %c0_34] : memref<64x1xf32, #tpu.memory_space<vmem>>, vector<64x1xf32>
      %48 = arith.mulf %39, %33 : vector<64x1xf32>
      %49 = arith.subf %47, %48 : vector<64x1xf32>
      %50 = vector.broadcast %cst_20 : f32 to vector<64x1xf32>
      %51 = arith.mulf %49, %50 : vector<64x1xf32>
      %52 = arith.mulf %39, %37 : vector<64x1xf32>
      %53 = arith.subf %51, %52 : vector<64x1xf32>
      %cst_35 = arith.constant 1.000000e+00 : f32
      %54 = vector.broadcast %cst_35 : f32 to vector<64x1xf32>
      %55 = arith.maximumf %38, %54 : vector<64x1xf32>
      %56 = arith.divf %46, %55 : vector<64x1xf32>
      %cst_36 = arith.constant 1.000000e+00 : f32
      %57 = vector.broadcast %cst_36 : f32 to vector<64x1xf32>
      %58 = arith.maximumf %39, %57 : vector<64x1xf32>
      %59 = arith.divf %53, %58 : vector<64x1xf32>
      %cst_37 = arith.constant -1.000000e+00 : f32
      %60 = vector.broadcast %cst_37 : f32 to vector<64x1xf32>
      %61 = arith.mulf %60, %56 : vector<64x1xf32>
      %cst_38 = arith.constant -1.000000e+00 : f32
      %62 = vector.broadcast %cst_38 : f32 to vector<64x1xf32>
      %63 = arith.mulf %62, %59 : vector<64x1xf32>
      %cst_39 = arith.constant 1.000000e-01 : f32
      %64 = vector.broadcast %cst_39 : f32 to vector<64x1xf32>
      %65 = arith.mulf %64, %61 : vector<64x1xf32>
      %cst_40 = arith.constant 1.000000e-01 : f32
      %66 = vector.broadcast %cst_40 : f32 to vector<64x1xf32>
      %67 = arith.mulf %66, %63 : vector<64x1xf32>
      %68 = arith.subf %65, %67 : vector<64x1xf32>
      %69 = tpu.iota {dimensions = array<i32: 0>} : vector<64x1xi32>
      %70 = vector.broadcast %0 : i32 to vector<64x1xi32>
      %71 = arith.addi %70, %69 : vector<64x1xi32>
      %c8_i32 = arith.constant 8 : i32
      %72 = vector.broadcast %c8_i32 : i32 to vector<64x1xi32>
      %73 = arith.cmpi slt, %71, %72 : vector<64x1xi32>
      %cst_41 = arith.constant 0.000000e+00 : f32
      %74 = vector.broadcast %cst_41 : f32 to vector<64x1xf32>
      %75 = arith.select %73, %68, %74 : vector<64x1xi1>, vector<64x1xf32>
      %c0_42 = arith.constant 0 : index
      %c0_43 = arith.constant 0 : index
      %76 = vector.load %arg6[%c0_42, %c0_43] : memref<64x1xf32, #tpu.memory_space<vmem>>, vector<64x1xf32>
      tpu.vector_store %arg6[%c0_42, %c0_43], %75 {strides = array<i32>} : memref<64x1xf32, #tpu.memory_space<vmem>>, vector<64x1xf32>,
    } else {
    }
    return
  }
  func.func @transform_0(%arg0: i32, %arg1: i32) -> (i32, i32) {
    %c0_i32 = arith.constant 0 : i32
    %c0_i32_0 = arith.constant 0 : i32
    return %arg0, %c0_i32 : i32, i32
  }
  func.func @transform_1(%arg0: i32, %arg1: i32) -> (i32, i32) {
    %c0_i32 = arith.constant 0 : i32
    %c0_i32_0 = arith.constant 0 : i32
    return %c0_i32, %arg1 : i32, i32
  }
  func.func @transform_2(%arg0: i32, %arg1: i32) -> (i32, i32) {
    %c0_i32 = arith.constant 0 : i32
    %c0_i32_0 = arith.constant 0 : i32
    return %arg0, %c0_i32 : i32, i32
  }
  func.func @transform_3(%arg0: i32, %arg1: i32) -> (i32, i32) {
    %c0_i32 = arith.constant 0 : i32
    %c0_i32_0 = arith.constant 0 : i32
    return %c0_i32, %arg1 : i32, i32
  }
  func.func @transform_4(%arg0: i32, %arg1: i32) -> (i32, i32) {
    %c0_i32 = arith.constant 0 : i32
    %c0_i32_0 = arith.constant 0 : i32
    return %arg0, %c0_i32 : i32, i32
  }
}

</mosaic_0001>

<bundles_post_ra>
// kernel: tpu_custom_call.1
= control target key start
LH: loop header
LB: loop body
LE: loop exit
PB: predicated region body
PF: predicated region fallthrough
CT: control target
= control target key end

     0   :  { %9 = vsyncpa [#allocation10], 0  ;;  %s2147_s15 = smov 0   ;;  %s2149_s16 = smov 0   ;;  %s3027_s0 = inlined_call_operand.vmem [shape: f32[128,128], index: 0, kind: input, shape index: {}]   ;;  %s3028_s1 = inlined_call_operand.hbm [shape: f32[128,128], index: 1, kind: input, shape index: {}]   ;;  %s3029_s2 = inlined_call_operand.vmem [shape: s32[128,2], index: 2, kind: input, shape index: {}]   ;;  %s3030_s3 = inlined_call_operand.vmem [shape: s32[2,128], index: 3, kind: input, shape index: {}]   ;;  %s3031_s4 = inlined_call_operand.vmem [shape: f32[128,1], index: 4, kind: output, shape index: {}]  }
   0x1   :  { %s2151_s17 = smov 0  }
   0x2 LB: > { %s1796_s18 = sadd.s32 4294967295, %s2113_s17   ;;  %s27_s19 = sadd.s32 1, %s2109_s16  ;;  %s2113_s17 = sphi %s2151_s17, %s15_s17   ;;  %s2109_s16 = sphi %s2149_s16, %s3188_s16   ;;  %s2105_s15 = sphi %s2147_s15, %s3187_s15  }
   0x3   : > { %p29_p0 = scmp.ge.s32.totalorder %s27_s19, 2  ;;  %p1798_p1 = scmp.ge.s32.totalorder %s2113_s17, 1 }
   0x4   : > { %p162_p2 = scmp.lt.s32.totalorder %s2113_s17, 3  ;;  %p2172_p4 = scmp.eq.s32.totalorder %s1796_s18, 0 }
   0x5   : > { %s3190_s19 = smov (%p29_p0, %s27_s19), 0  ;;  %s2115_s22 = smov [#allocation9]  }
   0x6   : > { %p2168_p3 = pnand %p1798_p1, %p162_p2  ;;  %s176_s23 = sshll.u32 %s2115_s22, 4  ;;  %s177_s23 = int_to_ptr.vmem [resolvable:$true] %s176_s23 }
   0x7   : > { %s3053_s21 = scalar_select %p2172_p4, 1, 0 }
   0x8   : > { %s3052_s20 = scalar_select %p2168_p3, 1, 0 }
   0x9   : > { %p1936_p5 = pneg %p2168_p3  ;;  %s2059_s27 = scalar_lea.hbm %s3028_s1, 2048 }
   0xa   : > { %p2060_p7 = scmp.ne.s32.totalorder %s3028_s1, %s2059_s27  ;;  %p2066_p11 = scmp.lt.u32.totalorder %s2059_s27, %s3028_s1 }
   0xb   : > { %p2180_p6 = pnand %p2172_p4, %p1936_p5 }
   0xd   : > { %p2061_p8 = pneg %p2180_p6 }
   0xf   : > { %p2062_p9 = pnand %p2061_p8, %p2060_p7 }
  0x11   : > { %p2063_p10 = pneg %p2062_p9 }
  0x13   : > { %p2068_p12 = pnand %p2066_p11, %p2063_p10 }
  0x15   : > { %2071 = shalt.err (!%p2068_p12)
}
  0x16   : > { %s2072_s6 = scalar_lea.vmem %s177_s23, 2048  ;;  %p2080_p2 = scmp.lt.s32.totalorder %s177_s23, %s177_s23 }
  0x17   : > { %p2073_p13 = scmp.ne.s32.totalorder %s177_s23, %s2072_s6  ;;  %p2081_p5 = scmp.lt.s32.totalorder %s2072_s6, %s2072_s6 }
  0x19   : > { %p2075_p0 = pnand %p2073_p13, %p2061_p8  ;;  %p2082_p4 = por %p2081_p5, %p2080_p2 }
  0x1b   : > { %p2076_p1 = pneg %p2075_p0 }
  0x1d   : > { %p2083_p3 = pnand %p2082_p4, %p2076_p1 }
  0x1f   : > { %2086 = shalt.err (!%p2083_p3)
}
  0x20   : > { %s2116_s7 = smov 128   ;;  %s2117_s8 = smov 8  }
  0x21   : > { %1939 = dma.hbm_to_vmem [thread:$0]  (!%p2180_p6), %s3028_s1, 2048, %s177_s23, [#allocation10], %s2116_s7, %s2116_s7, %s2117_s8  }
  0x22   : > { %p3055_p7 = scmp.ne.s32.totalorder %s3052_s20, 0 }
  0x24   : > { %217 = sbr.rel (%p3055_p7) target bundleno = 951 (0x3b7), region = 36 }
  0x2b   : > { %p3056_p9 = scmp.ne.s32.totalorder %s3053_s21, 0 }
  0x2d   : > { %2100 = dma.done.wait (%p3056_p9), [#allocation10], 2048  }
  0x2e   : > { %2102 = vsyncadd (%p3056_p9), [#allocation10], 4294965248  ;;  %vm3037_vm0 = vcmask 7168   ;;  %s1804_s11 = sshll.u32 %s2105_s15, 3  ;;  %v3047_v0 = vmov 0.0   ;;  %v2119_v1 = vmov 0   ;;  %v558_v38 = vlaneseq }
  0x2f   : > { %289 = vst.msk [vmem:[#allocation3] sm:$0xff] %vm3037_vm0, %v3047_v0  ;;  %290 = vst.msk [vmem:[#allocation3 + $0x8] sm:$0xff] %vm3037_vm0, %v3047_v0  ;;  %p253_p3 = scmp.lt.s32.totalorder %s1804_s11, 15  ;;  %1973 = vset.pattern.permute.xlu1 %v2119_v1  ;;  %v345_v2 = vld [vmem:[#allocation9] sm:$0xff]  ;;  %v346_v3 = vld [vmem:[#allocation9 + $0x8] sm:$0xff]  ;;  %v2120_v37 = vmov 1  }
  0x30   : > { %291 = vst.msk [vmem:[#allocation3 + $0x10] sm:$0xff] %vm3037_vm0, %v3047_v0  ;;  %292 = vst.msk [vmem:[#allocation3 + $0x18] sm:$0xff] %vm3037_vm0, %v3047_v0  ;;  %v347_v4 = vld [vmem:[#allocation9 + $0x10] sm:$0xff]  ;;  %v1884_v5 = vpack.c.bf16 %v346_v3, %v345_v2  ;;  %v348_v6 = vld [vmem:[#allocation9 + $0x18] sm:$0xff]  ;;  %1975 = vset.pattern.permute.xlu0 %v2120_v37  ;;  %v2327_v39 = vshrl.u32 %v558_v38, 7  ;;  %s1810_s23 = sshll.u32 %s2105_s15, 6 }
  0x31   : > { %293 = vst.msk [vmem:[#allocation3 + $0x20] sm:$0xff] %vm3037_vm0, %v3047_v0  ;;  %294 = vst.msk [vmem:[#allocation3 + $0x28] sm:$0xff] %vm3037_vm0, %v3047_v0  ;;  %s3192_s11 = smov (!%p253_p3, %s1804_s11), 15  ;;  %v1888_v7 = vpack.c.bf16 %v348_v6, %v347_v4  ;;  %v349_v8 = vld [vmem:[#allocation9 + $0x20] sm:$0xff]  ;;  %v350_v9 = vld [vmem:[#allocation9 + $0x28] sm:$0xff]  ;;  %v2331_v41 = vstv %s1810_s23  ;;  %v2333_v42 = vand.u32 127, %v558_v38 }
  0x32   : > { %295 = vst.msk [vmem:[#allocation3 + $0x30] sm:$0xff] %vm3037_vm0, %v3047_v0  ;;  %296 = vst.msk [vmem:[#allocation3 + $0x38] sm:$0xff] %vm3037_vm0, %v3047_v0  ;;  %s2292_s12 = sshll.u32 %s3192_s11, 3  ;;  %1885 = vmatprep.subr.bf16.mxu0 %v1884_v5  ;;  %1916 = vmatprep.subr.bf16.mxu1 %v1884_v5  ;;  %v1892_v10 = vpack.c.bf16 %v350_v9, %v349_v8  ;;  %v351_v13 = vld [vmem:[#allocation9 + $0x30] sm:$0xff]  ;;  %v352_v14 = vld [vmem:[#allocation9 + $0x38] sm:$0xff]  ;;  %v560_v40 = vadd.s32 8, %v2327_v39 }
  0x33   : > { %305 = vst.msk [vmem:[#allocation5] sm:$0xff] %vm3037_vm0, %v3047_v0  ;;  %306 = vst.msk [vmem:[#allocation5 + $0x8] sm:$0xff] %vm3037_vm0, %v3047_v0  ;;  %s2298_s18 = scalar_lea.vmem %s3027_s0, %s2292_s12  ;;  %1887 = vmatpush3.bf16.msra.mxu0 %v1884_v5  ;;  %1924 = vmatpush3.bf16.msra.mxu1 %v1884_v5  ;;  %s2306_s22 = scalar_lea.vmem %s3029_s2, %s2292_s12  ;;  %v1896_v16 = vpack.c.bf16 %v352_v14, %v351_v13  ;;  %v353_v17 = vld [vmem:[#allocation9 + $0x40] sm:$0xff]  ;;  %v354_v18 = vld [vmem:[#allocation9 + $0x48] sm:$0xff]  ;;  %v561_v44 = vadd.s32 16, %v2327_v39  ;;  %vm3038_vm1 = vcmp.lt.s32.totalorder %v2333_v42, 8 }
  0x34   : > { %307 = vst.msk [vmem:[#allocation5 + $0x10] sm:$0xff] %vm3037_vm0, %v3047_v0  ;;  %308 = vst.msk [vmem:[#allocation5 + $0x18] sm:$0xff] %vm3037_vm0, %v3047_v0  ;;  %1889 = vmatprep.subr.bf16.mxu0 %v1888_v7  ;;  %1917 = vmatprep.subr.bf16.mxu1 %v1888_v7  ;;  %v337_v11 = vld [vmem:[%s2298_s18] sm:$0xff]  ;;  %v2309_v15 = vld [vmem:[%s2306_s22 + $0x8] sm:$0xff]  ;;  %v1900_v20 = vpack.c.bf16 %v354_v18, %v353_v17  ;;  %v2336_v43 = vadd.s32 %v2331_v41, %v560_v40  ;;  %v3058_v48 = vmov 0  ;;  %v3060_v50 = vmov 0  ;;  %s2971_s29 = scalar_lea.vmem %s3031_s4, %s2292_s12 }
  0x35   : > { %309 = vst.msk [vmem:[#allocation5 + $0x20] sm:$0xff] %vm3037_vm0, %v3047_v0  ;;  %310 = vst.msk [vmem:[#allocation5 + $0x28] sm:$0xff] %vm3037_vm0, %v3047_v0  ;;  %v341_v12 = vld [vmem:[%s2298_s18 + $0x20] sm:$0xff]  ;;  %1872 = vmatprep.mubr.f32.mxu0 %v337_v11  ;;  %480 = vperm.xlu1 %1973, %v2309_v15   ;;  %v2313_v19 = vld [vmem:[%s2306_s22 + $0x10] sm:$0xff]  ;;  %v2348_v47 = vadd.s32 %v2331_v41, %v561_v44  ;;  %v3062_v53 = vmov 0  ;;  %v563_v44 = vadd.s32 32, %v2327_v39 }
  0x36   : > { %311 = vst.msk [vmem:[#allocation5 + $0x30] sm:$0xff] %vm3037_vm0, %v3047_v0  ;;  %312 = vst.msk [vmem:[#allocation5 + $0x38] sm:$0xff] %vm3037_vm0, %v3047_v0  ;;  %1878 = vmatprep.mubr.f32.mxu1 %v341_v12  ;;  %v355_v21 = vld [vmem:[#allocation9 + $0x50] sm:$0xff]  ;;  %v356_v22 = vld [vmem:[#allocation9 + $0x58] sm:$0xff]  ;;  %vm581_vm2 = vcmp.ne.s32.totalorder %v2336_v43, %v2333_v42  ;;  %v2121_v6 = vmov -1e+30  }
  0x37   : > { %313 = vst.msk [vmem:[#allocation6] sm:$0xff] %vm3037_vm0, %v3047_v0  ;;  %314 = vst.msk [vmem:[#allocation6 + $0x8] sm:$0xff] %vm3037_vm0, %v3047_v0  ;;  %1891 = vmatpush3.bf16.msra.mxu0 %v1888_v7  ;;  %1925 = vmatpush3.bf16.msra.mxu1 %v1888_v7  ;;  %v2317_v23 = vld [vmem:[%s2306_s22 + $0x20] sm:$0xff]  ;;  %v1904_v24 = vpack.c.bf16 %v356_v22, %v355_v21  ;;  %v358_v26 = vld [vmem:[#allocation9 + $0x68] sm:$0xff]  ;;  %vm582_vm5 = vcmp.ne.s32.totalorder %v2348_v47, %v2333_v42 }
  0x38   : > { %315 = vst.msk [vmem:[#allocation6 + $0x10] sm:$0xff] %vm3037_vm0, %v3047_v0  ;;  %316 = vst.msk [vmem:[#allocation6 + $0x18] sm:$0xff] %vm3037_vm0, %v3047_v0  ;;  %1893 = vmatprep.subr.bf16.mxu0 %v1892_v10  ;;  %1918 = vmatprep.subr.bf16.mxu1 %v1892_v10  ;;  %v357_v25 = vld [vmem:[#allocation9 + $0x60] sm:$0xff]  ;;  %v359_v28 = vld [vmem:[#allocation9 + $0x70] sm:$0xff] }
  0x39   : > { %317 = vst.msk [vmem:[#allocation6 + $0x20] sm:$0xff] %vm3037_vm0, %v3047_v0  ;;  %318 = vst.msk [vmem:[#allocation6 + $0x28] sm:$0xff] %vm3037_vm0, %v3047_v0  ;;  %483 = vperm.xlu1 %1973, %v2313_v19   ;;  %v1908_v27 = vpack.c.bf16 %v358_v26, %v357_v25  ;;  %v360_v29 = vld [vmem:[#allocation9 + $0x78] sm:$0xff]  ;;  %v338_v31 = vld [vmem:[%s2298_s18 + $0x8] sm:$0xff] }
  0x3a   : > { %319 = vst.msk [vmem:[#allocation6 + $0x30] sm:$0xff] %vm3037_vm0, %v3047_v0  ;;  %320 = vst.msk [vmem:[#allocation6 + $0x38] sm:$0xff] %vm3037_vm0, %v3047_v0  ;;  %v1912_v30 = vpack.c.bf16 %v360_v29, %v359_v28  ;;  %v342_v32 = vld [vmem:[%s2298_s18 + $0x28] sm:$0xff]  ;;  %v339_v33 = vld [vmem:[%s2298_s18 + $0x10] sm:$0xff] }
  0x3b   : > { %321 = vst.msk [vmem:[#allocation7] sm:$0xff] %vm3037_vm0, %v3047_v0  ;;  %322 = vst.msk [vmem:[#allocation7 + $0x8] sm:$0xff] %vm3037_vm0, %v3047_v0  ;;  %1895 = vmatpush3.bf16.msra.mxu0 %v1892_v10  ;;  %1926 = vmatpush3.bf16.msra.mxu1 %v1892_v10  ;;  %v343_v34 = vld [vmem:[%s2298_s18 + $0x30] sm:$0xff]  ;;  %v340_v35 = vld [vmem:[%s2298_s18 + $0x18] sm:$0xff] }
  0x3c   : > { %323 = vst.msk [vmem:[#allocation7 + $0x10] sm:$0xff] %vm3037_vm0, %v3047_v0  ;;  %324 = vst.msk [vmem:[#allocation7 + $0x18] sm:$0xff] %vm3037_vm0, %v3047_v0  ;;  %1897 = vmatprep.subr.bf16.mxu0 %v1896_v16  ;;  %1919 = vmatprep.subr.bf16.mxu1 %v1896_v16  ;;  %v344_v36 = vld [vmem:[%s2298_s18 + $0x38] sm:$0xff]  ;;  %v2342_v45 = vld [vmem:[%s3030_s3] ss:$0 sm:$0xff] }
  0x3d   : > { %325 = vst.msk [vmem:[#allocation7 + $0x20] sm:$0xff] %vm3037_vm0, %v3047_v0  ;;  %326 = vst.msk [vmem:[#allocation7 + $0x28] sm:$0xff] %vm3037_vm0, %v3047_v0  ;;  %489 = vperm.xlu1 %1973, %v2317_v23   ;;  %v472_v9 = vld [vmem:[%s2306_s22 + $0x30] sm:$0xff]  ;;  %v466_v10 = vld [vmem:[%s2306_s22] sm:$0xff] }
  0x3e   : > { %327 = vst.msk [vmem:[#allocation7 + $0x30] sm:$0xff] %vm3037_vm0, %v3047_v0  ;;  %328 = vst.msk [vmem:[#allocation7 + $0x38] sm:$0xff] %vm3037_vm0, %v3047_v0  ;;  %v469_v11 = vld [vmem:[%s2306_s22 + $0x18] sm:$0xff]  ;;  %v2442_v13 = vld [vmem:[%s2306_s22 + $0x28] sm:$0xff] }
  0x3f   : > { %329 = vst.msk [vmem:[#allocation8] sm:$0xff] %vm3037_vm0, %v3047_v0  ;;  %330 = vst.msk [vmem:[#allocation8 + $0x8] sm:$0xff] %vm3037_vm0, %v3047_v0  ;;  %1899 = vmatpush3.bf16.msra.mxu0 %v1896_v16  ;;  %1927 = vmatpush3.bf16.msra.mxu1 %v1896_v16  ;;  %v2446_v14 = vld [vmem:[%s2306_s22 + $0x38] sm:$0xff] }
  0x40   : > { %331 = vst.msk [vmem:[#allocation8 + $0x10] sm:$0xff] %vm3037_vm0, %v3047_v0  ;;  %332 = vst.msk [vmem:[#allocation8 + $0x18] sm:$0xff] %vm3037_vm0, %v3047_v0  ;;  %1901 = vmatprep.subr.bf16.mxu0 %v1900_v20  ;;  %1920 = vmatprep.subr.bf16.mxu1 %v1900_v20 }
  0x41   : > { %333 = vst.msk [vmem:[#allocation8 + $0x20] sm:$0xff] %vm3037_vm0, %v3047_v0  ;;  %334 = vst.msk [vmem:[#allocation8 + $0x28] sm:$0xff] %vm3037_vm0, %v3047_v0 }
  0x42   : > { %335 = vst.msk [vmem:[#allocation8 + $0x30] sm:$0xff] %vm3037_vm0, %v3047_v0  ;;  %336 = vst.msk [vmem:[#allocation8 + $0x38] sm:$0xff] %vm3037_vm0, %v3047_v0 }
  0x43   : > { %1903 = vmatpush3.bf16.msra.mxu0 %v1900_v20  ;;  %1928 = vmatpush3.bf16.msra.mxu1 %v1900_v20  ;;  %3057 = vst [vmem:[#allocation12_spill] sm:$0xff] %v2348_v47  ;;  %vm2353_vm4 = vmand %vm581_vm2, %vm3038_vm1 }
  0x44   : > { %1905 = vmatprep.subr.bf16.mxu0 %v1904_v24  ;;  %1921 = vmatprep.subr.bf16.mxu1 %v1904_v24  ;;  %v3059_v48 = vsel %vm2353_vm4, 4294967295, %v3058_v48  ;;  %vm2372_vm8 = vmand %vm582_vm5, %vm3038_vm1  ;;  %286 = vst.msk [vmem:[#allocation2 + $0x28] sm:$0xff] %vm3037_vm0, %v2121_v6 }
  0x45   : > { %v3063_v53 = vsel %vm2372_vm8, 4294967295, %v3062_v53  ;;  %281 = vst.msk [vmem:[#allocation2] sm:$0xff] %vm3037_vm0, %v2121_v6  ;;  %282 = vst.msk [vmem:[#allocation2 + $0x8] sm:$0xff] %vm3037_vm0, %v2121_v6 }
  0x46   : > { %283 = vst.msk [vmem:[#allocation2 + $0x10] sm:$0xff] %vm3037_vm0, %v2121_v6  ;;  %284 = vst.msk [vmem:[#allocation2 + $0x18] sm:$0xff] %vm3037_vm0, %v2121_v6 }
  0x47   : > { %1907 = vmatpush3.bf16.msra.mxu0 %v1904_v24  ;;  %1929 = vmatpush3.bf16.msra.mxu1 %v1904_v24  ;;  %285 = vst.msk [vmem:[#allocation2 + $0x20] sm:$0xff] %vm3037_vm0, %v2121_v6  ;;  %287 = vst.msk [vmem:[#allocation2 + $0x30] sm:$0xff] %vm3037_vm0, %v2121_v6 }
  0x48   : > { %1909 = vmatprep.subr.bf16.mxu0 %v1908_v27  ;;  %1922 = vmatprep.subr.bf16.mxu1 %v1908_v27  ;;  %288 = vst.msk [vmem:[#allocation2 + $0x38] sm:$0xff] %vm3037_vm0, %v2121_v6 }
  0x4b   : > { %1911 = vmatpush3.bf16.msra.mxu0 %v1908_v27  ;;  %1930 = vmatpush3.bf16.msra.mxu1 %v1908_v27  ;;  %v2454_v17 = vld [vmem:[#allocation2 + $0x28] sm:$0xff] }
  0x4c   : > { %1913 = vmatprep.subr.bf16.mxu0 %v1912_v30  ;;  %1923 = vmatprep.subr.bf16.mxu1 %v1912_v30  ;;  %v2464_v22 = vld [vmem:[#allocation2] sm:$0xff] }
  0x4d   : > { %v2502_v40 = vld [vmem:[#allocation2 + $0x10] sm:$0xff] }
  0x4f   : > { %1915 = vmatpush3.bf16.msra.mxu0 %v1912_v30  ;;  %1931 = vmatpush3.bf16.msra.mxu1 %v1912_v30  ;;  %v2483_v30 = vld [vmem:[#allocation2 + $0x20] sm:$0xff] }
  0x52   : > { %1873 = vmatmul.mubr.f32.vlgmr.msra.gmra.mrb[0].mxu0 %v338_v31  ;;  %1879 = vmatmul.mubr.f32.vlgmr.msra.gmra.mrb[0].mxu1 %v342_v32 }
  0x53   : > { %1875 = vmatprep.mubr.f32.mxu0 %v339_v33  ;;  %1881 = vmatprep.mubr.f32.mxu1 %v343_v34  ;;  %v2494_v33 = vld [vmem:[#allocation2 + $0x38] sm:$0xff] }
  0x56   : > { %1876 = vmatmul.mubr.f32.gmra.mrb[2].mxu0 %v340_v35  ;;  %1882 = vmatmul.mubr.f32.gmra.mrb[2].mxu1 %v344_v36 }
  0xb4   : > { %v481_v46 = vpop.permute.xlu1 %480 }
  0xb5   : > { %vm505_vm3 = vcmp.eq.s32.totalorder %v481_v46, %v2342_v45 }
  0xb6   : > { %vm2361_vm6 = vmand %vm505_vm3, %vm2353_vm4 }
  0xb7   : > { %v3061_v50 = vsel %vm2361_vm6, 4294967295, %v3060_v50 }
  0xb8   : > { %v484_v49 = vpop.permute.xlu1 %483 }
  0xb9   : > { %vm506_vm7 = vcmp.eq.s32.totalorder %v484_v49, %v2342_v45  ;;  %v2512_v49 = vadd.s32 %v2331_v41, %v2327_v39 }
  0xba   : > { %vm2391_vm9 = vmand %vm506_vm7, %vm2372_vm8 }
  0xbb   : > { %vm580_vm10 = vcmp.ne.s32.totalorder %v2512_v49, %v2333_v42 }
  0xbc   : > { %v2452_v16 = vpop.permute.xlu1 %489  ;;  %vm2542_vm12 = vmand %vm580_vm10, %vm3038_vm1 }
 0x125   : > { %v2366_v51 = vpop.f32.mrb[0].mxu0  ;;  %v2368_v52 = vpop.f32.mrb[0].mxu1 }
 0x126   : > { %v2376_v54 = vpop.f32.mrb[1].mxu0  ;;  %v604_v55 = vsel %vm3038_vm1, %v2368_v52, -3e+38  ;;  %v600_v56 = vsel %vm3038_vm1, %v2366_v51, -3e+38  ;;  %v2384_v57 = vpop.f32.mrb[1].mxu1 }
 0x127   : > { %625 = vmax.xlane.f32.xlu1 %v604_v55  ;;  %617 = vmax.xlane.f32.xlu0 %v600_v56  ;;  %v599_v62 = vsel %vm3038_vm1, %v2376_v54, -3e+38  ;;  %v603_v7 = vsel %vm3038_vm1, %v2384_v57, -3e+38  ;;  %v2620_v55 = vld [vmem:[#allocation2 + $0x30] sm:$0xff] }
 0x129   : > { %v2395_v60 = vpop.f32.mrb[2].mxu0  ;;  %v2397_v61 = vpop.f32.mrb[2].mxu1 }
 0x12a   : > { %v602_v63 = vsel %vm3038_vm1, %v2395_v60, -3e+38  ;;  %v2405_v2 = vpop.f32.mrb[3].mxu0  ;;  %v2407_v3 = vpop.f32.mrb[3].mxu1  ;;  %v606_v5 = vsel %vm3038_vm1, %v2397_v61, -3e+38 }
 0x12b   : > { %615 = vmax.xlane.f32.xlu0 %v599_v62  ;;  %621 = vmax.xlane.f32.xlu1 %v602_v63  ;;  %v834_v4 = vsel %vm2391_vm9, %v2405_v2, 0.0  ;;  %v601_v8 = vsel %vm3038_vm1, %v2405_v2, -3e+38  ;;  %v605_v12 = vsel %vm3038_vm1, %v2407_v3, -3e+38 }
 0x12c   : > { %v2524_v63 = vld [vmem:[%s3030_s3 + $0x1] ss:$0 sm:$0xff] }
 0x12f   : > { %623 = vmax.xlane.f32.xlu0 %v603_v7  ;;  %629 = vmax.xlane.f32.xlu1 %v606_v5  ;;  %v2527_v5 = vadd.s32 %v2331_v41, %v563_v44 }
 0x131   : > { %3066 = vst [vmem:[#allocation13_spill] sm:$0xff] %v2527_v5  ;;  %vm584_vm13 = vcmp.ne.s32.totalorder %v2527_v5, %v2333_v42 }
 0x132   : > { %vm2565_vm3 = vmand %vm584_vm13, %vm3038_vm1 }
 0x133   : > { %619 = vmax.xlane.f32.xlu1 %v601_v8 }
 0x144   : > { %495 = vperm.xlu1 %1973, %v472_v9  }
 0x145   : > { %516 = vperm.xlu0 %1975, %v2309_v15   ;;  %v881_v15 = vsel %vm2361_vm6, 1.0, %v3047_v0 }
 0x148   : > { %1974 = vset.pattern.permute.xlu1 %v2120_v37 }
 0x149   : > { %525 = vperm.xlu0 %1975, %v2317_v23   ;;  %513 = vperm.xlu1 %1974, %v466_v10   ;;  %v2466_v23 = vld [vmem:[#allocation2 + $0x18] sm:$0xff] }
 0x14d   : > { %519 = vperm.xlu1 %1974, %v2313_v19  }
 0x151   : > { %522 = vperm.xlu1 %1974, %v469_v11  }
 0x155   : > { %1976 = vset.pattern.permute.xlu1 %v2119_v1 }
 0x168   : > { %627 = vmax.xlane.f32.xlu0 %v605_v12 }
 0x17e   : > { %531 = vperm.xlu0 %1975, %v472_v9   ;;  %v562_v9 = vadd.s32 24, %v2327_v39 }
 0x182   : > { %1978 = vset.pattern.permute.xlu0 %v2119_v1  ;;  %v2456_v1 = vld [vmem:[#allocation2 + $0x8] sm:$0xff] }
 0x183   : > { %477 = vperm.xlu0 %1978, %v466_v10   ;;  %v3067_v10 = vmov 0 }
 0x184   : > { %v3068_v10 = vsel %vm2542_vm12, 4294967295, %v3067_v10 }
 0x187   : > { %486 = vperm.xlu0 %1978, %v469_v11   ;;  %v830_v11 = vld [vmem:[#allocation5 + $0x30] sm:$0xff] }
 0x18b   : > { %492 = vperm.xlu0 %1978, %v2442_v13  }
 0x18f   : > { %498 = vperm.xlu0 %1978, %v2446_v14  }
 0x1ae   : > { %890 = vadd.xlane.f32.xlu0 %v881_v15 }
 0x1b4   : > { %v626_v18 = vpop.xlane.xlu1 %625  ;;  %v618_v19 = vpop.xlane.xlu0 %617 }
 0x1b5   : > { %v2459_v20 = vmax.f32 %v2454_v17, %v626_v18  ;;  %v2462_v21 = vmax.f32 %v2456_v1, %v618_v19  ;;  %v2556_v18 = vadd.s32 %v2331_v41, %v562_v9  ;;  %v3079_v9 = vmov 0 }
 0x1b7   : > { %645 = vst.msk [vmem:[#allocation2 + $0x28] sm:$0xff] %vm3037_vm0, %v2459_v20  ;;  %641 = vst.msk [vmem:[#allocation2 + $0x8] sm:$0xff] %vm3037_vm0, %v2462_v21  ;;  %703 = vperm.xlu1 %1976, %v2462_v21   ;;  %vm583_vm10 = vcmp.ne.s32.totalorder %v2556_v18, %v2333_v42 }
 0x1b8   : > { %v616_v26 = vpop.xlane.xlu0 %615  ;;  %v622_v27 = vpop.xlane.xlu1 %621 }
 0x1b9   : > { %v2478_v28 = vmax.f32 %v2464_v22, %v616_v26  ;;  %v2481_v29 = vmax.f32 %v2466_v23, %v622_v27  ;;  %v3153_v27 = vsub.f32 %v2454_v17, %v2459_v20 }
 0x1bb   : > { %640 = vst.msk [vmem:[#allocation2] sm:$0xff] %vm3037_vm0, %v2478_v28  ;;  %643 = vst.msk [vmem:[#allocation2 + $0x18] sm:$0xff] %vm3037_vm0, %v2481_v29  ;;  %723 = vperm.xlu1 %1976, %v2459_v20   ;;  %v827_v20 = vld [vmem:[#allocation5 + $0x18] sm:$0xff] }
 0x1bc   : > { %v624_v34 = vpop.xlane.xlu0 %623  ;;  %v630_v35 = vpop.xlane.xlu1 %629 }
 0x1bd   : > { %v2497_v36 = vmax.f32 %v2483_v30, %v624_v34  ;;  %v2500_v38 = vmax.f32 %v2494_v33, %v630_v35  ;;  %v3088_v35 = vmov 0 }
 0x1bf   : > { %644 = vst.msk [vmem:[#allocation2 + $0x20] sm:$0xff] %vm3037_vm0, %v2497_v36  ;;  %698 = vperm.xlu1 %1976, %v2478_v28   ;;  %647 = vst.msk [vmem:[#allocation2 + $0x38] sm:$0xff] %vm3037_vm0, %v2500_v38 }
 0x1c0   : > { %v620_v56 = vpop.xlane.xlu1 %619 }
 0x1c1   : > { %v2519_v62 = vmax.f32 %v2502_v40, %v620_v56 }
 0x1c3   : > { %642 = vst.msk [vmem:[#allocation2 + $0x10] sm:$0xff] %vm3037_vm0, %v2519_v62  ;;  %718 = vperm.xlu1 %1976, %v2497_v36  }
 0x1c4   : > { %v517_v7 = vpop.permute.xlu0 %516  ;;  %v2536_v8 = vpop.permute.xlu1 %495 }
 0x1c5   : > { %vm541_vm11 = vcmp.eq.s32.totalorder %v517_v7, %v2524_v63 }
 0x1c6   : > { %vm2551_vm14 = vmand %vm541_vm11, %vm2353_vm4  ;;  %vm3092_vm4 = vcmp.lt.s32.totalorder %v2333_v42, 8 }
 0x1c7   : > { %713 = vperm.xlu1 %1976, %v2481_v29  }
 0x1c8   : > { %v526_v12 = vpop.permute.xlu0 %525  ;;  %v514_v15 = vpop.permute.xlu1 %513 }
 0x1c9   : > { %vm544_vm15 = vcmp.eq.s32.totalorder %v526_v12, %v2524_v63  ;;  %vm540_vm2 = vcmp.eq.s32.totalorder %v514_v15, %v2524_v63  ;;  %v566_v12 = vadd.s32 56, %v2327_v39 }
 0x1ca   : > { %vm2571_vm5 = vmand %vm540_vm2, %vm2542_vm12 }
 0x1cb   : > { %733 = vperm.xlu1 %1976, %v2500_v38   ;;  %vm2578_vm7 = vmand %vm544_vm15, %vm2565_vm3 }
 0x1cc   : > { %v520_v44 = vpop.permute.xlu1 %519  ;;  %vm2600_vm15 = vmand %vm583_vm10, %vm3038_vm1 }
 0x1cd   : > { %vm542_vm11 = vcmp.eq.s32.totalorder %v520_v44, %v2524_v63  ;;  %v3080_v9 = vsel %vm2600_vm15, 4294967295, %v3079_v9 }
 0x1ce   : > { %vm2593_vm13 = vmand %vm542_vm11, %vm2372_vm8 }
 0x1cf   : > { %708 = vperm.xlu1 %1976, %v2519_v62  }
 0x1d0   : > { %v523_v15 = vpop.permute.xlu1 %522 }
 0x1d1   : > { %vm543_vm2 = vcmp.eq.s32.totalorder %v523_v15, %v2524_v63  ;;  %v565_v15 = vadd.s32 48, %v2327_v39 }
 0x1d2   : > { %vm2610_vm11 = vmand %vm543_vm2, %vm2600_vm15 }
 0x1d3   : > { %1977 = vset.pattern.permute.xlu1 %v2120_v37  ;;  %v2627_v24 = vadd.s32 %v2331_v41, %v565_v15  ;;  %v978_v15 = vsel %vm2593_vm13, 1.0, %v3047_v0 }
 0x1d4   : > { %528 = vperm.xlu1 %1977, %v2442_v13   ;;  %v564_v13 = vadd.s32 40, %v2327_v39  ;;  %v3090_v39 = vmov 0 }
 0x1d5   : > { %3083 = vst [vmem:[#allocation14_spill] sm:$0xff] %v2627_v24  ;;  %vm586_vm10 = vcmp.ne.s32.totalorder %v2627_v24, %v2333_v42 }
 0x1d6   : > { %vm2637_vm8 = vmand %vm586_vm10, %vm3038_vm1 }
 0x1d8   : > { %534 = vperm.xlu1 %1977, %v2446_v14  }
 0x1f5   : > { %v628_v32 = vpop.xlane.xlu0 %627 }
 0x1f6   : > { %v2624_v31 = vmax.f32 %v2620_v55, %v628_v32 }
 0x1f8   : > { %646 = vst.msk [vmem:[#allocation2 + $0x30] sm:$0xff] %vm3037_vm0, %v2624_v31 }
 0x1fd   : > { %v532_v37 = vpop.permute.xlu0 %531 }
 0x1fe   : > { %vm546_vm2 = vcmp.eq.s32.totalorder %v532_v37, %v2524_v63  ;;  %v2651_v37 = vadd.s32 %v2331_v41, %v564_v13  ;;  %v2667_v13 = vadd.s32 %v2331_v41, %v566_v12  ;;  %v882_v41 = vsel %vm2391_vm9, 1.0, %v3047_v0 }
 0x1ff   : > { %vm2643_vm6 = vmand %vm546_vm2, %vm2637_vm8 }
 0x200   : > { %vm585_vm2 = vcmp.ne.s32.totalorder %v2651_v37, %v2333_v42  ;;  %v3152_v14 = vsel %vm2643_vm6, %v2407_v3, 0.0 }
 0x202   : > { %v478_v56 = vpop.permute.xlu0 %477 }
 0x203   : > { %vm504_vm10 = vcmp.eq.s32.totalorder %v478_v56, %v2342_v45 }
 0x204   : > { %vm2657_vm0 = vmand %vm504_vm10, %vm2542_vm12  ;;  %vm508_vm10 = vcmp.eq.s32.totalorder %v2452_v16, %v2342_v45  ;;  %v979_v16 = vsel %vm2610_vm11, 1.0, %v3047_v0 }
 0x205   : > { %v3089_v35 = vsel %vm2657_vm0, 4294967295, %v3088_v35  ;;  %v880_v46 = vsel %vm2657_vm0, 1.0, %v3047_v0  ;;  %vm2686_vm0 = vmand %vm585_vm2, %vm3092_vm4 }
 0x206   : > { %v487_v25 = vpop.permute.xlu0 %486  ;;  %888 = vadd.xlane.f32.xlu1 %v880_v46  ;;  %vm2700_vm4 = vmand %vm508_vm10, %vm2565_vm3 }
 0x207   : > { %vm507_vm1 = vcmp.eq.s32.totalorder %v487_v25, %v2342_v45  ;;  %v3093_v25 = vmov 0 }
 0x208   : > { %vm2674_vm12 = vmand %vm507_vm1, %vm2600_vm15  ;;  %v3094_v25 = vsel %vm2686_vm0, 4294967295, %v3093_v25  ;;  %vm587_vm1 = vcmp.ne.s32.totalorder %v2667_v13, %v2333_v42  ;;  %vm510_vm15 = vcmp.eq.s32.totalorder %v2536_v8, %v2342_v45  ;;  %v884_v8 = vsel %vm2700_vm4, 1.0, %v3047_v0 }
 0x209   : > { %v3091_v39 = vsel %vm2674_vm12, 4294967295, %v3090_v39  ;;  %v883_v46 = vsel %vm2674_vm12, 1.0, %v3047_v0  ;;  %vm3099_vm12 = vcmp.lt.s32.totalorder %v2333_v42, 8  ;;  %v969_v42 = vld [vmem:[#allocation8 + $0x8] sm:$0xff] }
 0x20a   : > { %894 = vadd.xlane.f32.xlu0 %v883_v46  ;;  %v493_v56 = vpop.permute.xlu0 %492  ;;  %892 = vadd.xlane.f32.xlu1 %v882_v41  ;;  %vm2718_vm10 = vmand %vm587_vm1, %vm3099_vm12  ;;  %vm3108_vm1 = vcmask 7168  }
 0x20b   : > { %vm509_vm9 = vcmp.eq.s32.totalorder %v493_v56, %v2342_v45  ;;  %v3137_v56 = vsel %vm2551_vm14, %v2366_v51, 0.0 }
 0x20c   : > { %vm2706_vm2 = vmand %vm509_vm9, %vm2686_vm0 }
 0x20d   : > { %v885_v41 = vsel %vm2706_vm2, 1.0, %v3047_v0  ;;  %vm2727_vm9 = vmand %vm510_vm15, %vm2637_vm8 }
 0x20e   : > { %898 = vadd.xlane.f32.xlu0 %v885_v41  ;;  %v499_v6 = vpop.permute.xlu0 %498  ;;  %896 = vadd.xlane.f32.xlu1 %v884_v8  ;;  %v886_v8 = vsel %vm2727_vm9, 1.0, %v3047_v0 }
 0x20f   : > { %vm511_vm0 = vcmp.eq.s32.totalorder %v499_v6, %v2342_v45  ;;  %v976_v45 = vsel %vm2571_vm5, 1.0, %v3047_v0  ;;  %v977_v6 = vsel %vm2551_vm14, 1.0, %v3047_v0 }
 0x210   : > { %vm2734_vm12 = vmand %vm511_vm0, %vm2718_vm10  ;;  %vm3106_vm0 = vnez %v3089_v35 }
 0x211   : > { %v887_v41 = vsel %vm2734_vm12, 1.0, %v3047_v0  ;;  %v3124_v46 = vsel %vm2734_vm12, %v2397_v61, 0.0 }
 0x212   : > { %902 = vadd.xlane.f32.xlu0 %v887_v41  ;;  %900 = vadd.xlane.f32.xlu1 %v886_v8  ;;  %v980_v41 = vsel %vm2578_vm7, 1.0, %v3047_v0  ;;  %v982_v8 = vsel %vm2643_vm6, 1.0, %v3047_v0 }
 0x216   : > { %986 = vadd.xlane.f32.xlu0 %v977_v6  ;;  %984 = vadd.xlane.f32.xlu1 %v976_v45  ;;  %v832_v45 = vsel %vm3106_vm0, %v2376_v54, 0.0  ;;  %vm3110_vm0 = vnez %v3094_v25 }
 0x21a   : > { %990 = vadd.xlane.f32.xlu0 %v979_v16  ;;  %988 = vadd.xlane.f32.xlu1 %v978_v15  ;;  %v836_v15 = vsel %vm2700_vm4, %v2384_v57, 0.0  ;;  %v838_v16 = vsel %vm2727_vm9, %v2407_v3, 0.0  ;;  %vm3109_vm4 = vnez %v3059_v48 }
 0x21e   : > { %992 = vadd.xlane.f32.xlu1 %v980_v41 }
 0x222   : > { %996 = vadd.xlane.f32.xlu1 %v982_v8  ;;  %v873_v8 = vld [vmem:[#allocation6 + $0x8] sm:$0xff] }
 0x226   : > { %840 = vadd.xlane.f32.xlu1 %v832_v45 }
 0x22a   : > { %844 = vadd.xlane.f32.xlu1 %v834_v4 }
 0x22e   : > { %848 = vadd.xlane.f32.xlu1 %v836_v15 }
 0x232   : > { %852 = vadd.xlane.f32.xlu1 %v838_v16 }
 0x236   : > { %v704_v6 = vpop.permute.xlu1 %703 }
 0x237   : > { %v737_v35 = vsub.f32 %v2366_v51, %v704_v6 }
 0x239   : > { %v745_v41 = vmul.f32 10.0, %v737_v35 }
 0x23a   : > { %v724_v45 = vpop.permute.xlu1 %723 }
 0x23b   : > { %v754_v59 = vmul.f32 1.442695, %v745_v41  ;;  %v741_v58 = vsub.f32 %v2368_v52, %v724_v45  ;;  %v891_v4 = vpop.xlane.xlu0 %890 }
 0x23c   : > { %v905_v0 = vadd.f32 %v891_v4, %v873_v8 }
 0x23d   : > { %1979 = vpow2.f32 %v754_v59 }
 0x23e   : > { %913 = vst.msk [vmem:[#allocation6 + $0x8] sm:$0xff] %vm3108_vm1, %v905_v0  ;;  %v699_v12 = vpop.permute.xlu1 %698 }
 0x23f   : > { %v736_v15 = vsub.f32 %v2376_v54, %v699_v12 }
 0x242   : > { %v719_v19 = vpop.permute.xlu1 %718 }
 0x243   : > { %v740_v16 = vsub.f32 %v2384_v57, %v719_v19 }
 0x245   : > { %v748_v24 = vmul.f32 10.0, %v740_v16 }
 0x246   : > { %v714_v5 = vpop.permute.xlu1 %713 }
 0x247   : > { %v1980_v6 = vpop.eup %1979  ;;  %v760_v35 = vmul.f32 1.442695, %v748_v24  ;;  %v739_v47 = vsub.f32 %v2395_v60, %v714_v5  ;;  %v3113_v5 = vmov 0.0  }
 0x248   : > { %v769_v41 = vsel %vm3109_vm4, %v1980_v6, 0.0  ;;  %vm3116_vm4 = vnez %v3061_v50 }
 0x249   : > { %1981 = vpow2.f32 %v760_v35  ;;  %778 = vadd.xlane.f32.xlu1 %v769_v41  ;;  %v749_v35 = vmul.f32 10.0, %v741_v58 }
 0x24a   : > { %v734_v8 = vpop.permute.xlu1 %733 }
 0x24b   : > { %v743_v0 = vsub.f32 %v2397_v61, %v734_v8  ;;  %v762_v8 = vmul.f32 1.442695, %v749_v35 }
 0x24d   : > { %1983 = vpow2.f32 %v762_v8  ;;  %v751_v35 = vmul.f32 10.0, %v743_v0 }
 0x24e   : > { %v709_v45 = vpop.permute.xlu1 %708 }
 0x24f   : > { %v738_v59 = vsub.f32 %v2405_v2, %v709_v45  ;;  %v744_v45 = vmul.f32 10.0, %v736_v15 }
 0x253   : > { %v1982_v4 = vpop.eup %1981  ;;  %v529_v12 = vpop.permute.xlu1 %528 }
 0x254   : > { %vm545_vm9 = vcmp.eq.s32.totalorder %v529_v12, %v2524_v63  ;;  %v772_v24 = vsel %vm2565_vm3, %v1982_v4, 0.0  ;;  %v3117_v4 = vsel %vm3116_vm4, %v2366_v51, 0.0  ;;  %v752_v12 = vmul.f32 1.442695, %v744_v45  ;;  %v876_v45 = vld [vmem:[#allocation6 + $0x20] sm:$0xff] }
 0x255   : > { %784 = vadd.xlane.f32.xlu1 %v772_v24  ;;  %vm2793_vm15 = vmand %vm545_vm9, %vm3110_vm0  ;;  %v747_v24 = vmul.f32 10.0, %v739_v47  ;;  %vm3118_vm9 = vnez %v3091_v39  ;;  %v3121_v47 = vsel %vm2706_vm2, %v2368_v52, 0.0  ;;  %v877_v39 = vld [vmem:[#allocation6 + $0x28] sm:$0xff] }
 0x256   : > { %v981_v19 = vsel %vm2793_vm15, 1.0, %v3113_v5  ;;  %v3119_v58 = vsel %vm3118_vm9, %v2395_v60, 0.0  ;;  %1985 = vpow2.f32 %v752_v12  ;;  %v3141_v51 = vsel %vm2793_vm15, %v2368_v52, 0.0 }
 0x257   : > { %994 = vadd.xlane.f32.xlu0 %v981_v19  ;;  %v535_v26 = vpop.permute.xlu1 %534  ;;  %v758_v15 = vmul.f32 1.442695, %v747_v24  ;;  %v1984_v24 = vpop.eup %1983  ;;  %v3145_v52 = vsub.f32 %v2483_v30, %v2497_v36 }
 0x258   : > { %vm547_vm3 = vcmp.eq.s32.totalorder %v535_v26, %v2524_v63  ;;  %v872_v63 = vld [vmem:[#allocation6] sm:$0xff] }
 0x259   : > { %vm2807_vm1 = vmand %vm547_vm3, %vm2718_vm10  ;;  %vm3120_vm3 = vcmask 7168   ;;  %1987 = vpow2.f32 %v758_v15 }
 0x25a   : > { %v983_v41 = vsel %vm2807_vm1, 1.0, %v3113_v5  ;;  %v875_v5 = vld [vmem:[#allocation6 + $0x18] sm:$0xff]  ;;  %vm3122_vm4 = vmmov %vm3120_vm3  ;;  %v935_v44 = vsel %vm2807_vm1, %v2397_v61, 0.0 }
 0x25b   : > { %vm3123_vm9 = vmmov %vm3120_vm3 }
 0x25c   : > { %vm3125_vm2 = vmmov %vm3120_vm3 }
 0x25d   : > { %vm3127_vm12 = vmmov %vm3125_vm2 }
 0x26d   : > { %728 = vperm.xlu0 %1978, %v2624_v31  }
 0x28c   : > { %998 = vadd.xlane.f32.xlu0 %v983_v41  ;;  %v874_v41 = vld [vmem:[#allocation6 + $0x10] sm:$0xff] }
 0x290   : > { %842 = vadd.xlane.f32.xlu0 %v3117_v4 }
 0x293   : > { %v889_v19 = vpop.xlane.xlu1 %888 }
 0x294   : > { %v904_v26 = vadd.f32 %v889_v19, %v872_v63  ;;  %846 = vadd.xlane.f32.xlu0 %v3119_v58  ;;  %v766_v63 = vmul.f32 1.442695, %v751_v35  ;;  %v746_v19 = vmul.f32 10.0, %v738_v59  ;;  %v773_v35 = vsel %vm3110_vm0, %v1984_v24, 0.0  ;;  %v970_v24 = vld [vmem:[#allocation8 + $0x10] sm:$0xff]  ;;  %vm3130_vm0 = vmmov %vm3125_vm2 }
 0x296   : > { %912 = vst.msk [vmem:[#allocation6] sm:$0xff] %vm3120_vm3, %v904_v26  ;;  %1989 = vpow2.f32 %v766_v63  ;;  %v756_v15 = vmul.f32 1.442695, %v746_v19  ;;  %vm3126_vm3 = vmmov %vm3125_vm2 }
 0x297   : > { %v895_v50 = vpop.xlane.xlu0 %894  ;;  %v893_v4 = vpop.xlane.xlu1 %892 }
 0x298   : > { %v907_v16 = vadd.f32 %v895_v50, %v875_v5  ;;  %v906_v8 = vadd.f32 %v893_v4, %v874_v41  ;;  %850 = vadd.xlane.f32.xlu0 %v3121_v47  ;;  %v879_v5 = vld [vmem:[#allocation6 + $0x38] sm:$0xff]  ;;  %v878_v41 = vld [vmem:[#allocation6 + $0x30] sm:$0xff]  ;;  %v1986_v50 = vpop.eup %1985  ;;  %v968_v47 = vld [vmem:[#allocation8] sm:$0xff]  ;;  %1991 = vpow2.f32 %v756_v15 }
 0x299   : > { %v1988_v19 = vpop.eup %1987 }
 0x29a   : > { %915 = vst.msk [vmem:[#allocation6 + $0x18] sm:$0xff] %vm3122_vm4, %v907_v16  ;;  %vm3128_vm4 = vmmov %vm3125_vm2 }
 0x29b   : > { %914 = vst.msk [vmem:[#allocation6 + $0x10] sm:$0xff] %vm3123_vm9, %v906_v8  ;;  %v899_v0 = vpop.xlane.xlu0 %898  ;;  %v897_v12 = vpop.xlane.xlu1 %896  ;;  %vm3129_vm9 = vnez %v3068_v10  ;;  %v972_v10 = vld [vmem:[#allocation8 + $0x20] sm:$0xff] }
 0x29c   : > { %v909_v26 = vadd.f32 %v899_v0, %v877_v39  ;;  %v908_v58 = vadd.f32 %v897_v12, %v876_v45  ;;  %854 = vadd.xlane.f32.xlu0 %v3124_v46  ;;  %v768_v63 = vsel %vm3129_vm9, %v1986_v50, 0.0  ;;  %v971_v12 = vld [vmem:[#allocation8 + $0x18] sm:$0xff]  ;;  %vm3135_vm9 = vmmov %vm3130_vm0 }
 0x29e   : > { %917 = vst.msk [vmem:[#allocation6 + $0x28] sm:$0xff] %vm3125_vm2, %v909_v26  ;;  %vm3131_vm2 = vmmov %vm3130_vm0 }
 0x29f   : > { %916 = vst.msk [vmem:[#allocation6 + $0x20] sm:$0xff] %vm3126_vm3, %v908_v58  ;;  %v903_v59 = vpop.xlane.xlu0 %902  ;;  %v901_v16 = vpop.xlane.xlu1 %900  ;;  %vm3132_vm3 = vnez %v3080_v9  ;;  %vm3142_vm14 = vmmov %vm3131_vm2 }
 0x2a0   : > { %v911_v4 = vadd.f32 %v903_v59, %v879_v5  ;;  %v910_v8 = vadd.f32 %v901_v16, %v878_v41  ;;  %786 = vadd.xlane.f32.xlu0 %v773_v35  ;;  %v771_v46 = vsel %vm3132_vm3, %v1988_v19, 0.0  ;;  %v1990_v5 = vpop.eup %1989  ;;  %vm3140_vm3 = vmmov %vm3131_vm2 }
 0x2a1   : > { %v775_v16 = vsel %vm2718_vm10, %v1990_v5, 0.0  ;;  %vm3138_vm10 = vmmov %vm3131_vm2  ;;  %v668_v5 = vmul.f32 10.0, %v3145_v52 }
 0x2a2   : > { %919 = vst.msk [vmem:[#allocation6 + $0x38] sm:$0xff] %vm3127_vm12, %v911_v4  ;;  %vm3133_vm12 = vmmov %vm3130_vm0  ;;  %v1992_v35 = vpop.eup %1991  ;;  %v974_v4 = vld [vmem:[#allocation8 + $0x30] sm:$0xff] }
 0x2a3   : > { %918 = vst.msk [vmem:[#allocation6 + $0x30] sm:$0xff] %vm3128_vm4, %v910_v8  ;;  %v987_v39 = vpop.xlane.xlu0 %986  ;;  %v985_v45 = vpop.xlane.xlu1 %984  ;;  %vm3134_vm4 = vmmov %vm3130_vm0 }
 0x2a4   : > { %v1001_v0 = vadd.f32 %v987_v39, %v969_v42  ;;  %v1000_v25 = vadd.f32 %v985_v45, %v968_v47  ;;  %776 = vadd.xlane.f32.xlu0 %v768_v63  ;;  %v824_v47 = vld [vmem:[#allocation5] sm:$0xff]  ;;  %v826_v63 = vld [vmem:[#allocation5 + $0x10] sm:$0xff]  ;;  %vm3146_vm15 = vmmov %vm3131_vm2 }
 0x2a5   : > { %vm3147_vm1 = vmmov %vm3131_vm2 }
 0x2a6   : > { %1009 = vst.msk [vmem:[#allocation8 + $0x8] sm:$0xff] %vm3130_vm0, %v1001_v0  ;;  %vm3136_vm0 = vnez %v3063_v53  ;;  %v3139_v53 = vsel %vm2610_vm11, %v2395_v60, 0.0  ;;  %v3143_v60 = vsub.f32 %v2456_v1, %v2462_v21  ;;  %vm3144_vm11 = vmmov %vm3131_vm2  ;;  %v652_v21 = vld [vmem:[#allocation3 + $0x20] sm:$0xff] }
 0x2a7   : > { %1008 = vst.msk [vmem:[#allocation8] sm:$0xff] %vm3131_vm2, %v1000_v25  ;;  %v991_v26 = vpop.xlane.xlu0 %990  ;;  %v989_v58 = vpop.xlane.xlu1 %988  ;;  %v770_v8 = vsel %vm3136_vm0, %v1992_v35, 0.0  ;;  %v828_v25 = vld [vmem:[#allocation5 + $0x20] sm:$0xff]  ;;  %vm3157_vm6 = vmmov %vm3147_vm1 }
 0x2a8   : > { %v1003_v41 = vadd.f32 %v991_v26, %v971_v12  ;;  %v1002_v15 = vadd.f32 %v989_v58, %v970_v24  ;;  %782 = vadd.xlane.f32.xlu0 %v771_v46  ;;  %v665_v58 = vmul.f32 10.0, %v3143_v60  ;;  %vm3165_vm0 = vmmov %vm3147_vm1 }
 0x2aa   : > { %1011 = vst.msk [vmem:[#allocation8 + $0x18] sm:$0xff] %vm3133_vm12, %v1003_v41  ;;  %v674_v48 = vmul.f32 1.442695, %v665_v58  ;;  %v680_v41 = vmul.f32 1.442695, %v668_v5  ;;  %vm3148_vm12 = vmmov %vm3147_vm1 }
 0x2ab   : > { %1010 = vst.msk [vmem:[#allocation8 + $0x10] sm:$0xff] %vm3134_vm4, %v1002_v15  ;;  %v993_v59 = vpop.xlane.xlu1 %992  ;;  %vm3163_vm4 = vmmov %vm3147_vm1 }
 0x2ac   : > { %v1004_v50 = vadd.f32 %v993_v59, %v972_v10  ;;  %790 = vadd.xlane.f32.xlu0 %v775_v16  ;;  %1993 = vpow2.f32 %v674_v48  ;;  %v649_v10 = vld [vmem:[#allocation3 + $0x8] sm:$0xff]  ;;  %v831_v48 = vld [vmem:[#allocation5 + $0x38] sm:$0xff] }
 0x2ad   : > { %1995 = vpow2.f32 %v680_v41  ;;  %v653_v41 = vld [vmem:[#allocation3 + $0x28] sm:$0xff] }
 0x2ae   : > { %1012 = vst.msk [vmem:[#allocation8 + $0x20] sm:$0xff] %vm3135_vm9, %v1004_v50  ;;  %v973_v50 = vld [vmem:[#allocation8 + $0x28] sm:$0xff]  ;;  %vm3164_vm9 = vmmov %vm3147_vm1 }
 0x2af   : > { %v997_v9 = vpop.xlane.xlu1 %996 }
 0x2b0   : > { %v1006_v42 = vadd.f32 %v997_v9, %v974_v4  ;;  %780 = vadd.xlane.f32.xlu0 %v770_v8 }
 0x2b2   : > { %1014 = vst.msk [vmem:[#allocation8 + $0x30] sm:$0xff] %vm3131_vm2, %v1006_v42  ;;  %vm3166_vm2 = vmmov %vm3165_vm0 }
 0x2b3   : > { %v841_v39 = vpop.xlane.xlu1 %840 }
 0x2b4   : > { %v856_v45 = vadd.f32 %v841_v39, %v824_v47  ;;  %938 = vadd.xlane.f32.xlu0 %v3137_v56  ;;  %v3149_v56 = vsel %vm2571_vm5, %v2376_v54, 0.0  ;;  %v669_v54 = vmul.f32 10.0, %v3153_v27  ;;  %vm3159_vm5 = vmmov %vm3147_vm1 }
 0x2b6   : > { %864 = vst.msk [vmem:[#allocation5] sm:$0xff] %vm3138_vm10, %v856_v45  ;;  %v1994_v15 = vpop.eup %1993  ;;  %vm3167_vm10 = vmmov %vm3165_vm0 }
 0x2b7   : > { %v845_v19 = vpop.xlane.xlu1 %844  ;;  %v689_v6 = vmul.f32 %v1994_v15, %v649_v10  ;;  %v1996_v1 = vpop.eup %1995 }
 0x2b8   : > { %v858_v0 = vadd.f32 %v845_v19, %v826_v63  ;;  %942 = vadd.xlane.f32.xlu0 %v3139_v53  ;;  %v692_v16 = vmul.f32 %v1996_v1, %v652_v21  ;;  %v3150_v63 = vsel %vm2593_vm13, %v2405_v2, 0.0  ;;  %v3151_v19 = vsel %vm2578_vm7, %v2384_v57, 0.0  ;;  %vm3161_vm7 = vmmov %vm3147_vm1 }
 0x2b9   : > { %v3154_v2 = vsub.f32 %v2464_v22, %v2478_v28  ;;  %v3158_v22 = vsub.f32 %v2494_v33, %v2500_v38  ;;  %vm3162_vm13 = vmmov %vm3147_vm1 }
 0x2ba   : > { %866 = vst.msk [vmem:[#allocation5 + $0x10] sm:$0xff] %vm3140_vm3, %v858_v0  ;;  %v975_v0 = vld [vmem:[#allocation8 + $0x38] sm:$0xff]  ;;  %vm3168_vm3 = vmmov %vm3165_vm0 }
 0x2bb   : > { %v849_v12 = vpop.xlane.xlu1 %848  ;;  %v664_v34 = vmul.f32 10.0, %v3154_v2  ;;  %v671_v28 = vmul.f32 10.0, %v3158_v22 }
 0x2bc   : > { %v860_v24 = vadd.f32 %v849_v12, %v828_v25  ;;  %946 = vadd.xlane.f32.xlu0 %v3141_v51  ;;  %v682_v25 = vmul.f32 1.442695, %v669_v54  ;;  %v825_v12 = vld [vmem:[#allocation5 + $0x8] sm:$0xff] }
 0x2be   : > { %868 = vst.msk [vmem:[#allocation5 + $0x20] sm:$0xff] %vm3142_vm14, %v860_v24  ;;  %v3156_v24 = vsub.f32 %v2466_v23, %v2481_v29  ;;  %v3160_v23 = vsub.f32 %v2502_v40, %v2519_v62  ;;  %vm3169_vm14 = vmmov %vm3165_vm0 }
 0x2bf   : > { %v853_v26 = vpop.xlane.xlu1 %852 }
 0x2c0   : > { %v862_v46 = vadd.f32 %v853_v26, %v830_v11  ;;  %950 = vadd.xlane.f32.xlu0 %v935_v44  ;;  %v667_v17 = vmul.f32 10.0, %v3156_v24  ;;  %v829_v44 = vld [vmem:[#allocation5 + $0x28] sm:$0xff]  ;;  %v666_v29 = vmul.f32 10.0, %v3160_v23 }
 0x2c2   : > { %870 = vst.msk [vmem:[#allocation5 + $0x30] sm:$0xff] %vm3144_vm11, %v862_v46  ;;  %v678_v26 = vmul.f32 1.442695, %v667_v17  ;;  %v686_v46 = vmul.f32 1.442695, %v671_v28  ;;  %v923_v28 = vld [vmem:[#allocation7 + $0x18] sm:$0xff]  ;;  %vm3170_vm11 = vmmov %vm3165_vm0 }
 0x2c3   : > { %v676_v33 = vmul.f32 1.442695, %v666_v29 }
 0x2d6   : > { %v779_v61 = vpop.xlane.xlu1 %778 }
 0x2d7   : > { %v793_v59 = vadd.f32 %v779_v61, %v689_v6  ;;  %v648_v61 = vld [vmem:[#allocation3] sm:$0xff] }
 0x2d9   : > { %801 = vst.msk [vmem:[#allocation3 + $0x8] sm:$0xff] %vm3146_vm15, %v793_v59  ;;  %vm3171_vm15 = vmmov %vm3165_vm0 }
 0x2e0   : > { %v1416_v1 = vld [vmem:[#allocation3 + $0x8] sm:$0xff] }
 0x2e2   : > { %v785_v35 = vpop.xlane.xlu1 %784 }
 0x2e3   : > { %v796_v4 = vadd.f32 %v785_v35, %v692_v16  ;;  %v651_v16 = vld [vmem:[#allocation3 + $0x18] sm:$0xff]  ;;  %v1424_v35 = vmax.f32 %v1416_v1, 1e-30 }
 0x2e4   : > { %v995_v9 = vpop.xlane.xlu0 %994 }
 0x2e5   : > { %804 = vst.msk [vmem:[#allocation3 + $0x20] sm:$0xff] %vm3147_vm1, %v796_v4  ;;  %v1005_v30 = vadd.f32 %v995_v9, %v973_v50 }
 0x2e7   : > { %1013 = vst.msk [vmem:[#allocation8 + $0x28] sm:$0xff] %vm3148_vm12, %v1005_v30  ;;  %vm1668_vm12 = vcmp.lt.s32.totalorder %v2556_v18, 8 }
 0x2ec   : > { %v729_v36 = vpop.permute.xlu0 %728 }
 0x2ed   : > { %v742_v8 = vsub.f32 %v2407_v3, %v729_v36  ;;  %v672_v3 = vmul.f32 1.442695, %v664_v34  ;;  %v655_v36 = vld [vmem:[#allocation3 + $0x38] sm:$0xff] }
 0x2ef   : > { %v750_v42 = vmul.f32 10.0, %v742_v8 }
 0x2f1   : > { %v764_v47 = vmul.f32 1.442695, %v750_v42 }
 0x2f3   : > { %1997 = vpow2.f32 %v764_v47 }
 0x2f4   : > { %1999 = vpow2.f32 %v682_v25 }
 0x2f5   : > { %2001 = vpow2.f32 %v672_v3 }
 0x2f6   : > { %2003 = vpow2.f32 %v678_v26 }
 0x2f7   : > { %2005 = vpow2.f32 %v686_v46 }
 0x2f8   : > { %2007 = vpow2.f32 %v676_v33 }
 0x2f9   : > { %2009 = vlog2.f32 %v1424_v35 }
 0x2fd   : > { %v1998_v39 = vpop.eup %1997 }
 0x2fe   : > { %v774_v45 = vsel %vm2637_vm8, %v1998_v39, 0.0  ;;  %vm3155_vm8 = vmmov %vm3147_vm1  ;;  %v2000_v52 = vpop.eup %1999  ;;  %vm1666_vm1 = vcmp.lt.s32.totalorder %v2336_v43, 8 }
 0x2ff   : > { %788 = vadd.xlane.f32.xlu1 %v774_v45  ;;  %v693_v38 = vmul.f32 %v2000_v52, %v653_v41  ;;  %v2002_v10 = vpop.eup %2001 }
 0x300   : > { %v688_v40 = vmul.f32 %v2002_v10, %v648_v61  ;;  %v2004_v62 = vpop.eup %2003  ;;  %v1410_v61 = vld [vmem:[#allocation2 + $0x18] sm:$0xff] }
 0x301   : > { %v691_v4 = vmul.f32 %v2004_v62, %v651_v16  ;;  %v2006_v9 = vpop.eup %2005 }
 0x302   : > { %v695_v39 = vmul.f32 %v2006_v9, %v655_v36  ;;  %v2008_v45 = vpop.eup %2007 }
 0x303   : > { %936 = vadd.xlane.f32.xlu1 %v3149_v56 }
 0x307   : > { %940 = vadd.xlane.f32.xlu1 %v3150_v63  ;;  %v650_v63 = vld [vmem:[#allocation3 + $0x10] sm:$0xff] }
 0x308   : > { %v690_v27 = vmul.f32 %v2008_v45, %v650_v63 }
 0x30b   : > { %944 = vadd.xlane.f32.xlu1 %v3151_v19  ;;  %v1448_v19 = vld [vmem:[#allocation6 + $0x8] sm:$0xff] }
 0x30c   : > { %v1560_v54 = vmax.f32 %v1448_v19, 1.0 }
 0x30f   : > { %948 = vadd.xlane.f32.xlu1 %v3152_v14 }
 0x319   : > { %v999_v53 = vpop.xlane.xlu0 %998 }
 0x31a   : > { %v1007_v7 = vadd.f32 %v999_v53, %v975_v0  ;;  %v1408_v53 = vld [vmem:[#allocation2 + $0x8] sm:$0xff] }
 0x31b   : > { %v1472_v2 = vmul.f32 %v1448_v19, %v1408_v53 }
 0x31c   : > { %1015 = vst.msk [vmem:[#allocation8 + $0x38] sm:$0xff] %vm3155_vm8, %v1007_v7  ;;  %vm3172_vm8 = vmmov %vm3165_vm0 }
 0x31d   : > { %v843_v57 = vpop.xlane.xlu0 %842 }
 0x31e   : > { %v857_v32 = vadd.f32 %v843_v57, %v825_v12  ;;  %v921_v12 = vld [vmem:[#allocation7 + $0x8] sm:$0xff]  ;;  %v2010_v57 = vpop.eup %2009 }
 0x31f   : > { %v1434_v26 = vmul.f32 0.6931472, %v2010_v57 }
 0x320   : > { %865 = vst.msk [vmem:[#allocation5 + $0x8] sm:$0xff] %vm3157_vm6, %v857_v32  ;;  %v2924_v32 = vld [vmem:[#allocation8 + $0x8] sm:$0xff]  ;;  %vm1670_vm6 = vcmp.lt.s32.totalorder %v2651_v37, 8 }
 0x321   : > { %v847_v51 = vpop.xlane.xlu0 %846  ;;  %v1496_v10 = vmul.f32 %v1448_v19, %v1434_v26  ;;  %v1520_v9 = vmul.f32 %v2924_v32, %v1408_v53 }
 0x322   : > { %v859_v11 = vadd.f32 %v847_v51, %v827_v20  ;;  %v2927_v51 = vld [vmem:[#allocation6 + $0x18] sm:$0xff] }
 0x323   : > { %v1474_v62 = vmul.f32 %v2927_v51, %v1410_v61 }
 0x324   : > { %867 = vst.msk [vmem:[#allocation5 + $0x18] sm:$0xff] %vm3159_vm5, %v859_v11  ;;  %v1584_v11 = vmax.f32 %v2924_v32, 1.0  ;;  %vm3173_vm5 = vmmov %vm3165_vm0 }
 0x325   : > { %v851_v60 = vpop.xlane.xlu0 %850 }
 0x326   : > { %v861_v58 = vadd.f32 %v851_v60, %v829_v44  ;;  %v1562_v44 = vmax.f32 %v2927_v51, 1.0 }
 0x327   : > { %v1464_v7 = vld [vmem:[#allocation5 + $0x8] sm:$0xff] }
 0x328   : > { %869 = vst.msk [vmem:[#allocation5 + $0x28] sm:$0xff] %vm3161_vm7, %v861_v58  ;;  %v1480_v24 = vsub.f32 %v1464_v7, %v1472_v2  ;;  %v1452_v58 = vld [vmem:[#allocation6 + $0x28] sm:$0xff]  ;;  %vm1672_vm7 = vcmp.lt.s32.totalorder %v2667_v13, 8 }
 0x329   : > { %v855_v5 = vpop.xlane.xlu0 %854  ;;  %v1564_v52 = vmax.f32 %v1452_v58, 1.0 }
 0x32a   : > { %v863_v15 = vadd.f32 %v855_v5, %v831_v48  ;;  %v1488_v46 = vmul.f32 10.0, %v1480_v24  ;;  %v2932_v48 = vld [vmem:[#allocation2 + $0x28] sm:$0xff]  ;;  %v2934_v5 = vld [vmem:[#allocation8 + $0x18] sm:$0xff] }
 0x32b   : > { %v1586_v33 = vmax.f32 %v2934_v5, 1.0  ;;  %v1466_v1 = vld [vmem:[#allocation5 + $0x18] sm:$0xff] }
 0x32c   : > { %871 = vst.msk [vmem:[#allocation5 + $0x38] sm:$0xff] %vm3162_vm13, %v863_v15  ;;  %v2936_v15 = vld [vmem:[#allocation6 + $0x38] sm:$0xff]  ;;  %v1504_v16 = vsub.f32 %v1488_v46, %v1496_v10  ;;  %vm3174_vm13 = vmmov %vm3165_vm0 }
 0x32d   : > { %v787_v6 = vpop.xlane.xlu0 %786 }
 0x32e   : > { %v797_v59 = vadd.f32 %v787_v6, %v693_v38  ;;  %v2939_v38 = vld [vmem:[#allocation8 + $0x28] sm:$0xff] }
 0x32f   : > { %v925_v6 = vld [vmem:[#allocation7 + $0x28] sm:$0xff] }
 0x330   : > { %805 = vst.msk [vmem:[#allocation3 + $0x28] sm:$0xff] %vm3163_vm4, %v797_v59  ;;  %v1566_v59 = vmax.f32 %v2936_v15, 1.0  ;;  %vm3175_vm4 = vmmov %vm3165_vm0 }
 0x331   : > { %v777_v21 = vpop.xlane.xlu0 %776 }
 0x332   : > { %v792_v50 = vadd.f32 %v777_v21, %v688_v40  ;;  %v1468_v40 = vld [vmem:[#allocation5 + $0x28] sm:$0xff]  ;;  %v1476_v21 = vmul.f32 %v1452_v58, %v2932_v48 }
 0x334   : > { %800 = vst.msk [vmem:[#allocation3] sm:$0xff] %vm3164_vm9, %v792_v50  ;;  %vm3176_vm9 = vmmov %vm3165_vm0 }
 0x335   : > { %v783_v30 = vpop.xlane.xlu0 %782 }
 0x336   : > { %v795_v8 = vadd.f32 %v783_v30, %v691_v4  ;;  %v1414_v4 = vld [vmem:[#allocation2 + $0x38] sm:$0xff]  ;;  %v1588_v30 = vmax.f32 %v2939_v38, 1.0 }
 0x337   : > { %v1420_v42 = vld [vmem:[#allocation3 + $0x28] sm:$0xff]  ;;  %v1478_v19 = vmul.f32 %v2936_v15, %v1414_v4 }
 0x338   : > { %v1428_v47 = vmax.f32 %v1420_v42, 1e-30  ;;  %803 = vst.msk [vmem:[#allocation3 + $0x18] sm:$0xff] %vm3165_vm0, %v795_v8  ;;  %v2949_v42 = vld [vmem:[#allocation8 + $0x38] sm:$0xff] }
 0x339   : > { %v791_v56 = vpop.xlane.xlu0 %790 }
 0x33a   : > { %v799_v14 = vadd.f32 %v791_v56, %v695_v39  ;;  %2011 = vlog2.f32 %v1428_v47  ;;  %v1482_v47 = vsub.f32 %v1466_v1, %v1474_v62  ;;  %v1484_v39 = vsub.f32 %v1468_v40, %v1476_v21  ;;  %v927_v56 = vld [vmem:[#allocation7 + $0x38] sm:$0xff] }
 0x33b   : > { %2013 = vrcp.f32 %v1560_v54  ;;  %v1526_v1 = vmul.f32 %v2949_v42, %v1414_v4 }
 0x33c   : > { %807 = vst.msk [vmem:[#allocation3 + $0x38] sm:$0xff] %vm3166_vm2, %v799_v14  ;;  %v1522_v14 = vmul.f32 %v2934_v5, %v1410_v61  ;;  %v1492_v24 = vmul.f32 10.0, %v1484_v39  ;;  %vm3177_vm2 = vmmov %vm3165_vm0 }
 0x33d   : > { %v781_v0 = vpop.xlane.xlu0 %780 }
 0x33e   : > { %v794_v25 = vadd.f32 %v781_v0, %v690_v27  ;;  %v1470_v27 = vld [vmem:[#allocation5 + $0x38] sm:$0xff] }
 0x33f   : > { %v1418_v34 = vld [vmem:[#allocation3 + $0x18] sm:$0xff] }
 0x340   : > { %v1426_v3 = vmax.f32 %v1418_v34, 1e-30  ;;  %802 = vst.msk [vmem:[#allocation3 + $0x10] sm:$0xff] %vm3167_vm10, %v794_v25  ;;  %v1544_v25 = vmul.f32 %v2924_v32, %v1434_v26  ;;  %v1590_v34 = vmax.f32 %v2949_v42, 1.0  ;;  %vm3178_vm10 = vmmov %vm3165_vm0 }
 0x341   : > { %v939_v17 = vpop.xlane.xlu0 %938 }
 0x342   : > { %2015 = vlog2.f32 %v1426_v3  ;;  %v953_v20 = vadd.f32 %v939_v17, %v921_v12  ;;  %v1490_v3 = vmul.f32 10.0, %v1482_v47  ;;  %v1486_v17 = vsub.f32 %v1470_v27, %v1478_v19 }
 0x343   : > { %v1422_v22 = vld [vmem:[#allocation3 + $0x38] sm:$0xff] }
 0x344   : > { %v1430_v60 = vmax.f32 %v1422_v22, 1e-30  ;;  %961 = vst.msk [vmem:[#allocation7 + $0x8] sm:$0xff] %vm3168_vm3, %v953_v20  ;;  %v2012_v29 = vpop.eup %2011  ;;  %vm3179_vm3 = vmmov %vm3165_vm0 }
 0x345   : > { %v943_v23 = vpop.xlane.xlu0 %942  ;;  %v2945_v35 = vmul.f32 0.6931472, %v2012_v29  ;;  %v2014_v8 = vpop.eup %2013  ;;  %v1524_v29 = vmul.f32 %v2939_v38, %v2932_v48 }
 0x346   : > { %2017 = vlog2.f32 %v1430_v60  ;;  %v955_v41 = vadd.f32 %v943_v23, %v923_v28  ;;  %v1570_v0 = vmul.f32 %v2014_v8, %v1504_v16 }
 0x347   : > { %2019 = vrcp.f32 %v1584_v11  ;;  %v1500_v53 = vmul.f32 %v1452_v58, %v2945_v35 }
 0x348   : > { %2021 = vrcp.f32 %v1562_v44  ;;  %963 = vst.msk [vmem:[#allocation7 + $0x18] sm:$0xff] %vm3169_vm14, %v955_v41  ;;  %v1608_v58 = vmul.f32 -1.0, %v1570_v0  ;;  %vm1665_vm14 = vcmp.lt.s32.totalorder %v2512_v49, 8 }
 0x349   : > { %v947_v50 = vpop.xlane.xlu0 %946  ;;  %2023 = vrcp.f32 %v1564_v52  ;;  %v1508_v32 = vsub.f32 %v1492_v24, %v1500_v53 }
 0x34a   : > { %v957_v36 = vadd.f32 %v947_v50, %v925_v6  ;;  %2025 = vrcp.f32 %v1586_v33  ;;  %v1624_v50 = vmul.f32 0.1, %v1608_v58 }
 0x34b   : > { %v1512_v45 = vld [vmem:[#allocation7 + $0x8] sm:$0xff]  ;;  %2027 = vrcp.f32 %v1566_v59 }
 0x34c   : > { %v2016_v63 = vpop.eup %2015  ;;  %v1528_v54 = vsub.f32 %v1512_v45, %v1520_v9  ;;  %965 = vst.msk [vmem:[#allocation7 + $0x28] sm:$0xff] %vm3170_vm11, %v957_v36  ;;  %2029 = vrcp.f32 %v1588_v30 }
 0x34d   : > { %v1438_v7 = vmul.f32 0.6931472, %v2016_v63  ;;  %v951_v2 = vpop.xlane.xlu0 %950  ;;  %2031 = vrcp.f32 %v1590_v34 }
 0x34e   : > { %v1536_v12 = vmul.f32 10.0, %v1528_v54  ;;  %v959_v57 = vadd.f32 %v951_v2, %v927_v56 }
 0x34f   : > { %v1498_v20 = vmul.f32 %v2927_v51, %v1438_v7  ;;  %v1514_v11 = vld [vmem:[#allocation7 + $0x18] sm:$0xff]  ;;  %v1546_v41 = vmul.f32 %v2934_v5, %v1438_v7  ;;  %v1494_v51 = vmul.f32 10.0, %v1486_v17 }
 0x350   : > { %v2018_v22 = vpop.eup %2017  ;;  %v1552_v28 = vsub.f32 %v1536_v12, %v1544_v25  ;;  %v1530_v44 = vsub.f32 %v1514_v11, %v1522_v14  ;;  %967 = vst.msk [vmem:[#allocation7 + $0x38] sm:$0xff] %vm3171_vm15, %v959_v57  ;;  %vm3181_vm15 = vmmov %vm3165_vm0 }
 0x351   : > { %v2020_v60 = vpop.eup %2019  ;;  %v1506_v26 = vsub.f32 %v1490_v3, %v1498_v20  ;;  %v1446_v46 = vmul.f32 0.6931472, %v2018_v22 }
 0x352   : > { %v2022_v23 = vpop.eup %2021  ;;  %v1594_v52 = vmul.f32 %v2020_v60, %v1552_v28  ;;  %v1538_v33 = vmul.f32 10.0, %v1530_v44  ;;  %v662_v60 = vsub.f32 %v2620_v55, %v2624_v31  ;;  %v1449_v55 = vld [vmem:[#allocation6 + $0x10] sm:$0xff] }
 0x353   : > { %v1502_v10 = vmul.f32 %v2936_v15, %v1446_v46  ;;  %v1574_v6 = vmul.f32 %v2022_v23, %v1506_v26  ;;  %v1516_v61 = vld [vmem:[#allocation7 + $0x28] sm:$0xff]  ;;  %v2024_v59 = vpop.eup %2023  ;;  %v1548_v15 = vmul.f32 %v2939_v38, %v2945_v35  ;;  %v1550_v54 = vmul.f32 %v2949_v42, %v1446_v46  ;;  %v1417_v46 = vld [vmem:[#allocation3 + $0x10] sm:$0xff] }
 0x354   : > { %v1616_v40 = vmul.f32 -1.0, %v1594_v52  ;;  %v1554_v62 = vsub.f32 %v1538_v33, %v1546_v41  ;;  %v1532_v21 = vsub.f32 %v1516_v61, %v1524_v29  ;;  %v2026_v16 = vpop.eup %2025  ;;  %v1578_v30 = vmul.f32 %v2024_v59, %v1508_v32  ;;  %v1415_v32 = vld [vmem:[#allocation3] sm:$0xff]  ;;  %v654_v41 = vld [vmem:[#allocation3 + $0x30] sm:$0xff] }
 0x355   : > { %v1510_v48 = vsub.f32 %v1494_v51, %v1502_v10  ;;  %v1610_v9 = vmul.f32 -1.0, %v1574_v6  ;;  %v2028_v5 = vpop.eup %2027  ;;  %v670_v58 = vmul.f32 10.0, %v662_v60  ;;  %v1423_v26 = vmax.f32 %v1415_v32, 1e-30  ;;  %v1419_v29 = vld [vmem:[#allocation3 + $0x20] sm:$0xff]  ;;  %v926_v60 = vld [vmem:[#allocation7 + $0x30] sm:$0xff] }
 0x356   : > { %v1632_v36 = vmul.f32 0.1, %v1616_v40  ;;  %v1598_v8 = vmul.f32 %v2026_v16, %v1554_v62  ;;  %v1540_v47 = vmul.f32 10.0, %v1532_v21  ;;  %v2030_v4 = vpop.eup %2029  ;;  %v1612_v27 = vmul.f32 -1.0, %v1578_v30  ;;  %v1447_v10 = vld [vmem:[#allocation6] sm:$0xff] }
 0x357   : > { %v1518_v39 = vld [vmem:[#allocation7 + $0x38] sm:$0xff]  ;;  %v1626_v14 = vmul.f32 0.1, %v1610_v9  ;;  %v1582_v38 = vmul.f32 %v2028_v5, %v1510_v48  ;;  %v2032_v34 = vpop.eup %2031  ;;  %v684_v37 = vmul.f32 1.442695, %v670_v58  ;;  %v1559_v31 = vmax.f32 %v1447_v10, 1.0 }
 0x358   : > { %v1640_v45 = vsub.f32 %v1624_v50, %v1632_v36  ;;  %v1618_v56 = vmul.f32 -1.0, %v1598_v8  ;;  %v1556_v63 = vsub.f32 %v1540_v47, %v1548_v15  ;;  %v1534_v19 = vsub.f32 %v1518_v39, %v1526_v1  ;;  %v920_v59 = vld [vmem:[#allocation7] sm:$0xff]  ;;  %v922_v8 = vld [vmem:[#allocation7 + $0x10] sm:$0xff] }
 0x359   : > { %v1628_v12 = vmul.f32 0.1, %v1612_v27  ;;  %v1614_v42 = vmul.f32 -1.0, %v1582_v38  ;;  %2033 = vpow2.f32 %v684_v37  ;;  %v1425_v23 = vmax.f32 %v1417_v46, 1e-30  ;;  %v1407_v1 = vld [vmem:[#allocation2] sm:$0xff] }
 0x35a   : > { %v1674_v35 = vsel %vm1666_vm1, %v1640_v45, 0.0  ;;  %v1634_v43 = vmul.f32 0.1, %v1618_v56  ;;  %v1602_v0 = vmul.f32 %v2030_v4, %v1556_v63  ;;  %v1542_v53 = vmul.f32 10.0, %v1534_v19  ;;  %v1463_v40 = vld [vmem:[#allocation5] sm:$0xff]  ;;  %v1409_v15 = vld [vmem:[#allocation2 + $0x10] sm:$0xff] }
 0x35b   : > { %1683 = vst.msk [vmem:[%s2971_s29 + $0x8] sm:$0xff] %vm3172_vm8, %v1674_v35  ;;  %v1630_v11 = vmul.f32 0.1, %v1614_v42  ;;  %2035 = vlog2.f32 %v1423_v26  ;;  %v1427_v52 = vmax.f32 %v1419_v29, 1e-30  ;;  %v1471_v16 = vmul.f32 %v1447_v10, %v1407_v1  ;;  %v1451_v48 = vld [vmem:[#allocation6 + $0x20] sm:$0xff] }
 0x35c   : > { %v1642_v7 = vsub.f32 %v1626_v14, %v1634_v43  ;;  %v1620_v25 = vmul.f32 -1.0, %v1602_v0  ;;  %v1558_v2 = vsub.f32 %v1542_v53, %v1550_v54  ;;  %2037 = vlog2.f32 %v1425_v23  ;;  %v1455_v9 = vld [vmem:[#allocation8] sm:$0xff]  ;;  %v1465_v39 = vld [vmem:[#allocation5 + $0x10] sm:$0xff] }
 0x35d   : > { %2039 = vlog2.f32 %v1427_v52  ;;  %v1561_v50 = vmax.f32 %v1449_v55, 1.0  ;;  %v1583_v36 = vmax.f32 %v1455_v9, 1.0  ;;  %v1479_v47 = vsub.f32 %v1463_v40, %v1471_v16  ;;  %v1457_v14 = vld [vmem:[#allocation8 + $0x10] sm:$0xff]  ;;  %v924_v0 = vld [vmem:[#allocation7 + $0x20] sm:$0xff] }
 0x35e   : > { %v1676_v57 = vsel %vm1668_vm12, %v1642_v7, 0.0  ;;  %v1636_v3 = vmul.f32 0.1, %v1620_v25  ;;  %v1606_v24 = vmul.f32 %v2032_v34, %v1558_v2  ;;  %2041 = vrcp.f32 %v1559_v31  ;;  %v1411_v53 = vld [vmem:[#allocation2 + $0x20] sm:$0xff]  ;;  %v1461_v37 = vld [vmem:[#allocation8 + $0x30] sm:$0xff]  ;;  %vm3183_vm12 = vmmov %vm3165_vm0 }
 0x35f   : > { %1685 = vst.msk [vmem:[%s2971_s29 + $0x18] sm:$0xff] %vm3173_vm5, %v1676_v57  ;;  %v1473_v4 = vmul.f32 %v1449_v55, %v1409_v15  ;;  %v1563_v45 = vmax.f32 %v1451_v48, 1.0  ;;  %2043 = vrcp.f32 %v1561_v50  ;;  %v1585_v38 = vmax.f32 %v1457_v14, 1.0  ;;  %v2991_v7 = vld [vmem:[#allocation8 + $0x20] sm:$0xff]  ;;  %v2994_v57 = vld [vmem:[#allocation6 + $0x30] sm:$0xff]  ;;  %vm3186_vm5 = vmmov %vm3165_vm0 }
 0x360   : > { %v1644_v17 = vsub.f32 %v1628_v12, %v1636_v3  ;;  %v1622_v20 = vmul.f32 -1.0, %v1606_v24  ;;  %2045 = vrcp.f32 %v1583_v36  ;;  %v1487_v25 = vmul.f32 10.0, %v1479_v47  ;;  %v1467_v2 = vld [vmem:[#allocation5 + $0x20] sm:$0xff] }
 0x361   : > { %v1481_v35 = vsub.f32 %v1465_v39, %v1473_v4  ;;  %v1475_v12 = vmul.f32 %v1451_v48, %v1411_v53  ;;  %2047 = vrcp.f32 %v1563_v45  ;;  %v1565_v58 = vmax.f32 %v2994_v57, 1.0 }
 0x362   : > { %v1678_v18 = vsel %vm1670_vm6, %v1644_v17, 0.0  ;;  %v1638_v22 = vmul.f32 0.1, %v1622_v20  ;;  %v1519_v17 = vmul.f32 %v1455_v9, %v1407_v1  ;;  %v1521_v46 = vmul.f32 %v1457_v14, %v1409_v15  ;;  %vm3185_vm6 = vmmov %vm3165_vm0 }
 0x363   : > { %1687 = vst.msk [vmem:[%s2971_s29 + $0x28] sm:$0xff] %vm3174_vm13, %v1678_v18  ;;  %v2034_v13 = vpop.eup %2033  ;;  %v1523_v16 = vmul.f32 %v2991_v7, %v1411_v53 }
 0x364   : > { %v1646_v28 = vsub.f32 %v1630_v11, %v1638_v22  ;;  %v694_v33 = vmul.f32 %v2034_v13, %v654_v41  ;;  %v1587_v11 = vmax.f32 %v2991_v7, 1.0  ;;  %v1489_v22 = vmul.f32 10.0, %v1481_v35 }
 0x365   : > { %v2036_v61 = vpop.eup %2035 }
 0x366   : > { %v1680_v44 = vsel %vm1672_vm7, %v1646_v28, 0.0  ;;  %v2038_v21 = vpop.eup %2037  ;;  %v1432_v30 = vmul.f32 0.6931472, %v2036_v61  ;;  %v1483_v28 = vsub.f32 %v1467_v2, %v1475_v12 }
 0x367   : > { %1689 = vst.msk [vmem:[%s2971_s29 + $0x38] sm:$0xff] %vm3175_vm4, %v1680_v44  ;;  %v2989_v56 = vmul.f32 0.6931472, %v2038_v21  ;;  %v2040_v19 = vpop.eup %2039 }
 0x368   : > { %v1495_v27 = vmul.f32 %v1447_v10, %v1432_v30  ;;  %v1440_v3 = vmul.f32 0.6931472, %v2040_v19  ;;  %v2042_v26 = vpop.eup %2041  ;;  %v1543_v41 = vmul.f32 %v1455_v9, %v1432_v30  ;;  %v1589_v10 = vmax.f32 %v1461_v37, 1.0 }
 0x369   : > { %v1497_v42 = vmul.f32 %v1449_v55, %v2989_v56  ;;  %v2044_v31 = vpop.eup %2043  ;;  %v1413_v55 = vld [vmem:[#allocation2 + $0x30] sm:$0xff] }
 0x36a   : > { %v1503_v20 = vsub.f32 %v1487_v25, %v1495_v27  ;;  %v1499_v23 = vmul.f32 %v1451_v48, %v1440_v3  ;;  %v1477_v21 = vmul.f32 %v2994_v57, %v1413_v55  ;;  %v1525_v4 = vmul.f32 %v1461_v37, %v1413_v55  ;;  %v3184_v55 = vld [vmem:[#allocation14_spill] sm:$0xff] }
 0x36b   : > { %v1505_v29 = vsub.f32 %v1489_v22, %v1497_v42  ;;  %v1547_v35 = vmul.f32 %v2991_v7, %v1440_v3  ;;  %vm1671_vm8 = vcmp.lt.s32.totalorder %v3184_v55, 8 }
 0x36d   : > { %v1572_v48 = vmul.f32 %v2044_v31, %v1505_v29 }
 0x38c   : > { %v789_v51 = vpop.xlane.xlu1 %788 }
 0x38d   : > { %v798_v6 = vadd.f32 %v789_v51, %v694_v33  ;;  %v1568_v33 = vmul.f32 %v2042_v26, %v1503_v20 }
 0x38f   : > { %806 = vst.msk [vmem:[#allocation3 + $0x30] sm:$0xff] %vm3176_vm9, %v798_v6  ;;  %v1491_v6 = vmul.f32 10.0, %v1483_v28  ;;  %v1607_v30 = vmul.f32 -1.0, %v1568_v33  ;;  %v3182_v33 = vld [vmem:[#allocation13_spill] sm:$0xff] }
 0x390   : > { %v937_v62 = vpop.xlane.xlu1 %936  ;;  %vm1669_vm1 = vcmp.lt.s32.totalorder %v3182_v33, 8 }
 0x391   : > { %v952_v5 = vadd.f32 %v937_v62, %v920_v59  ;;  %v1469_v59 = vld [vmem:[#allocation5 + $0x30] sm:$0xff]  ;;  %v2046_v62 = vpop.eup %2045  ;;  %v1507_v50 = vsub.f32 %v1491_v6, %v1499_v23 }
 0x392   : > { %v1485_v15 = vsub.f32 %v1469_v59, %v1477_v21 }
 0x393   : > { %960 = vst.msk [vmem:[#allocation7] sm:$0xff] %vm3165_vm0, %v952_v5  ;;  %v1545_v5 = vmul.f32 %v1457_v14, %v2989_v56 }
 0x394   : > { %v941_v63 = vpop.xlane.xlu1 %940  ;;  %v1493_v14 = vmul.f32 10.0, %v1485_v15 }
 0x395   : > { %v954_v54 = vadd.f32 %v941_v63, %v922_v8  ;;  %v2048_v8 = vpop.eup %2047 }
 0x396   : > { %v1421_v43 = vld [vmem:[#allocation3 + $0x30] sm:$0xff] }
 0x397   : > { %v1429_v34 = vmax.f32 %v1421_v43, 1e-30  ;;  %962 = vst.msk [vmem:[#allocation7 + $0x10] sm:$0xff] %vm3177_vm2, %v954_v54  ;;  %v1576_v43 = vmul.f32 %v2048_v8, %v1507_v50 }
 0x398   : > { %v945_v24 = vpop.xlane.xlu1 %944 }
 0x399   : > { %2049 = vlog2.f32 %v1429_v34  ;;  %v956_v18 = vadd.f32 %v945_v24, %v924_v0  ;;  %v1623_v0 = vmul.f32 0.1, %v1607_v30  ;;  %v1611_v7 = vmul.f32 -1.0, %v1576_v43 }
 0x39a   : > { %2051 = vrcp.f32 %v1585_v38  ;;  %v1511_v44 = vld [vmem:[#allocation7] sm:$0xff]  ;;  %v1609_v38 = vmul.f32 -1.0, %v1572_v48 }
 0x39b   : > { %v1527_v32 = vsub.f32 %v1511_v44, %v1519_v17  ;;  %964 = vst.msk [vmem:[#allocation7 + $0x20] sm:$0xff] %vm3178_vm10, %v956_v18  ;;  %2053 = vrcp.f32 %v1587_v11  ;;  %v1627_v29 = vmul.f32 0.1, %v1611_v7 }
 0x39c   : > { %v949_v52 = vpop.xlane.xlu1 %948  ;;  %2055 = vrcp.f32 %v1565_v58  ;;  %v1625_v11 = vmul.f32 0.1, %v1609_v38  ;;  %v3180_v58 = vld [vmem:[#allocation12_spill] sm:$0xff] }
 0x39d   : > { %v1535_v13 = vmul.f32 10.0, %v1527_v32  ;;  %v958_v51 = vadd.f32 %v949_v52, %v926_v60  ;;  %2057 = vrcp.f32 %v1589_v10  ;;  %vm1667_vm11 = vcmp.lt.s32.totalorder %v3180_v58, 8 }
 0x39e   : > { %v1513_v61 = vld [vmem:[#allocation7 + $0x10] sm:$0xff] }
 0x39f   : > { %v1551_v1 = vsub.f32 %v1535_v13, %v1543_v41  ;;  %v1529_v40 = vsub.f32 %v1513_v61, %v1521_v46  ;;  %966 = vst.msk [vmem:[#allocation7 + $0x30] sm:$0xff] %vm3179_vm3, %v958_v51 }
 0x3a1   : > { %v1592_v9 = vmul.f32 %v2046_v62, %v1551_v1  ;;  %v1537_v36 = vmul.f32 10.0, %v1529_v40 }
 0x3a2   : > { %v1515_v47 = vld [vmem:[#allocation7 + $0x20] sm:$0xff] }
 0x3a3   : > { %v2050_v39 = vpop.eup %2049  ;;  %v1615_v45 = vmul.f32 -1.0, %v1592_v9  ;;  %v1553_v63 = vsub.f32 %v1537_v36, %v1545_v5  ;;  %v1531_v19 = vsub.f32 %v1515_v47, %v1523_v16 }
 0x3a4   : > { %v2052_v27 = vpop.eup %2051  ;;  %v1444_v54 = vmul.f32 0.6931472, %v2050_v39 }
 0x3a5   : > { %v1631_v53 = vmul.f32 0.1, %v1615_v45  ;;  %v1596_v25 = vmul.f32 %v2052_v27, %v1553_v63  ;;  %v1539_v56 = vmul.f32 10.0, %v1531_v19  ;;  %v2054_v20 = vpop.eup %2053 }
 0x3a6   : > { %v1501_v2 = vmul.f32 %v2994_v57, %v1444_v54  ;;  %v1517_v34 = vld [vmem:[#allocation7 + $0x30] sm:$0xff]  ;;  %v1549_v3 = vmul.f32 %v1461_v37, %v1444_v54  ;;  %v2056_v22 = vpop.eup %2055 }
 0x3a7   : > { %v1639_v12 = vsub.f32 %v1623_v0, %v1631_v53  ;;  %v1617_v42 = vmul.f32 -1.0, %v1596_v25  ;;  %v1555_v24 = vsub.f32 %v1539_v56, %v1547_v35  ;;  %v1533_v17 = vsub.f32 %v1517_v34, %v1525_v4  ;;  %v2058_v23 = vpop.eup %2057 }
 0x3a8   : > { %v1509_v18 = vsub.f32 %v1493_v14, %v1501_v2 }
 0x3a9   : > { %v1673_v28 = vsel %vm1665_vm14, %v1639_v12, 0.0  ;;  %v1633_v44 = vmul.f32 0.1, %v1617_v42  ;;  %v1600_v60 = vmul.f32 %v2054_v20, %v1555_v24  ;;  %v1541_v49 = vmul.f32 10.0, %v1533_v17 }
 0x3aa   : > { %1682 = vst.msk [vmem:[%s2971_s29] sm:$0xff] %vm3181_vm15, %v1673_v28  ;;  %v1580_v57 = vmul.f32 %v2056_v22, %v1509_v18 }
 0x3ab   : > { %v1641_v32 = vsub.f32 %v1625_v11, %v1633_v44  ;;  %v1619_v26 = vmul.f32 -1.0, %v1600_v60  ;;  %v1557_v46 = vsub.f32 %v1541_v49, %v1549_v3 }
 0x3ac   : > { %v1613_v13 = vmul.f32 -1.0, %v1580_v57 }
 0x3ad   : > { %v1675_v52 = vsel %vm1667_vm11, %v1641_v32, 0.0  ;;  %v1635_v37 = vmul.f32 0.1, %v1619_v26  ;;  %v1604_v41 = vmul.f32 %v2058_v23, %v1557_v46 }
 0x3ae   : > { %1684 = vst.msk [vmem:[%s2971_s29 + $0x10] sm:$0xff] %vm3183_vm12, %v1675_v52  ;;  %v1629_v61 = vmul.f32 0.1, %v1613_v13 }
 0x3af   : > { %v1643_v51 = vsub.f32 %v1627_v29, %v1635_v37  ;;  %v1621_v10 = vmul.f32 -1.0, %v1604_v41 }
 0x3b1   : > { %v1677_v6 = vsel %vm1669_vm1, %v1643_v51, 0.0  ;;  %v1637_v31 = vmul.f32 0.1, %v1621_v10 }
 0x3b2   : > { %1686 = vst.msk [vmem:[%s2971_s29 + $0x20] sm:$0xff] %vm3185_vm6, %v1677_v6 }
 0x3b3   : > { %v1645_v59 = vsub.f32 %v1629_v61, %v1637_v31 }
 0x3b5   : > { %v1679_v1 = vsel %vm1671_vm8, %v1645_v59, 0.0 }
 0x3b6   : > { %1688 = vst.msk [vmem:[%s2971_s29 + $0x30] sm:$0xff] %vm3186_vm5, %v1679_v1 }
 0x3b7 PF: > { %s15_s17 = sadd.s32 1, %s2113_s17   ;;  %s3187_s15 = smov %s2109_s16 }
 0x3b8   : > { %p12_p4 = scmp.ge.s32.totalorder %s15_s17, 4   ;;  %s3188_s16 = smov %s3190_s19 }
 0x3ba   :  { %14 = sbr.rel (!%p12_p4) target bundleno = 2 (0x2), region = 94 }
 0x3c1   :  { %1712 = vsyncpa [#allocation10], 1 }
 0x3c2   :  { %1714 = vsyncpa [#allocation10 + $0x1], 1 }

</bundles_post_ra>
